<compile_context>
chip_gen: v5e
topology: v5e:2x2
jax: 0.10.0
libtpu: 0.0.40
codegen_flags: <defaults>
</compile_context>

<pallas_src>
import functools

import jax
import jax.numpy as jnp
from jax import lax
from jax.experimental import pallas as pl
from jax.experimental.pallas import tpu as pltpu


def _rips_kernel(x_ref, h0_ref, d2_ref, *, n_real, use_bf16_gram, unroll):
    """x_ref: (n_pad, d) points; h0_ref: (1, n_pad) H0 deaths; d2_ref: (n_pad, n_pad) scratch."""
    n_pad = x_ref.shape[0]
    x = x_ref[...].astype(jnp.float32)                          # (n_pad, d)

    # ---- squared pairwise distances -> VMEM scratch (no HBM writeback) ----
    sq = jnp.sum(x * x, axis=-1, keepdims=True)                 # (n_pad, 1)
    xm = x.astype(jnp.bfloat16) if use_bf16_gram else x
    gram = lax.dot_general(xm, xm, (((1,), (1,)), ((), ())),
                           preferred_element_type=jnp.float32)  # (n_pad, n_pad)
    d2_ref[...] = sq + jnp.transpose(sq) - 2.0 * gram           # squared distances

    # ---- Prim's MST on squared distances (loop only touches (1, n_pad)) ----
    INF = jnp.float32(1e30)
    lane_idx = lax.broadcasted_iota(jnp.int32, (1, n_pad), 1)   # (1, n_pad)

    # vertex 0 seeds the tree; padded lanes are permanently "in tree".
    in_tree0 = jnp.where((lane_idx == 0) | (lane_idx >= n_real), 1, 0)
    mind0 = d2_ref[0:1, :]                                      # dist^2 to the tree
    deaths0 = jnp.zeros((1, n_pad), jnp.float32)

    def body(i, carry):
        in_tree, mind, deaths = carry
        masked = jnp.where(in_tree > 0, INF, mind)
        m = jnp.min(masked)                                     # next MST edge (squared)
        j = jnp.min(jnp.where(masked == m, lane_idx, n_pad))    # new vertex (scalar)
        deaths = jnp.where(lane_idx == i, m, deaths)            # record i-th death
        in_tree = jnp.where(lane_idx == j, 1, in_tree)
        row_j = d2_ref[pl.ds(j, 1), :]                          # (1, n_pad) dynamic row load
        mind = jnp.minimum(mind, row_j)
        return in_tree, mind, deaths

    steps = n_real - 1
    if steps > 0:
        _, _, deaths = lax.fori_loop(0, steps, body,
                                     (in_tree0, mind0, deaths0),
                                     unroll=unroll)
    else:
        deaths = deaths0

    # single sqrt/clamp pass over the (1, n_pad) deaths vector.
    h0_ref[...] = jnp.sqrt(jnp.maximum(deaths, 0.0))


def rips_layer_forward(x, maxdim=1):
    """Pallas equivalent of RipsLayer(n, maxdim).forward(x) for a (n, d) point cloud."""
    n, d = x.shape
    n_pad = max(128, ((n + 127) // 128) * 128)                  # lane-dense padding
    x_p = jnp.zeros((n_pad, d), jnp.float32).at[:n, :].set(x.astype(jnp.float32))

    steps = n - 1
    # full unroll for small point clouds; modest partial unroll otherwise.
    unroll = True if steps <= 32 else 8

    # VMEM budget: one (n_pad, n_pad) f32 scratch + small I/O, capped below the
    # v7x per-core 64 MiB limit.
    d2_bytes = 4 * n_pad * n_pad
    io_bytes = 4 * n_pad * (d + 16)
    vmem_limit = int(min(56 << 20, max(8 << 20, d2_bytes + 2 * io_bytes + (1 << 20))))

    deaths_row = pl.pallas_call(
        functools.partial(_rips_kernel, n_real=n,
                          use_bf16_gram=(d >= 64), unroll=unroll),
        out_shape=jax.ShapeDtypeStruct((1, n_pad), jnp.float32),
        in_specs=[pl.BlockSpec(memory_space=pltpu.MemorySpace.VMEM)],
        out_specs=pl.BlockSpec(memory_space=pltpu.MemorySpace.VMEM),
        scratch_shapes=[pltpu.VMEM((n_pad, n_pad), jnp.float32)],
        compiler_params=pltpu.CompilerParams(vmem_limit_bytes=vmem_limit),
    )(x_p)

    # glue: assemble diagrams (H0 births are all 0; one essential (0, inf) bar).
    finite_deaths = deaths_row[0, : n - 1]
    dgm0 = jnp.concatenate(
        [
            jnp.stack([jnp.zeros((n - 1,), jnp.float32), finite_deaths], axis=-1),
            jnp.array([[0.0, jnp.inf]], dtype=jnp.float32),
        ],
        axis=0,
    )                                                           # (n, 2)

    dgms = [dgm0]
    for _ in range(1, maxdim + 1):
        # TODO(synk): higher-dimensional persistence reduction has no clean Pallas equivalent.
        dgms.append(jnp.zeros((0, 2), jnp.float32))

    return tuple(dgms), True


if __name__ == "__main__":
    import numpy as np

    key = jax.random.PRNGKey(0)
    n, d = 16, 2
    x = jax.random.normal(key, (n, d), dtype=jnp.float32)

    (dgms, flag) = rips_layer_forward(x, maxdim=1)
    jax.block_until_ready(dgms[0])

    assert dgms[0].shape == (n, 2)
    assert dgms[1].shape == (0, 2)
    assert flag is True

    # lightweight correctness check: H0 finite deaths == MST edge lengths.
    xs = np.asarray(x, dtype=np.float64)
    D = np.sqrt(np.maximum(((xs[:, None, :] - xs[None, :, :]) ** 2).sum(-1), 0.0))
    in_tree = np.zeros(n, bool)
    in_tree[0] = True
    mind = D[0].copy()
    deaths_ref = []
    for _ in range(n - 1):
        mask = np.where(in_tree, np.inf, mind)
        j = int(np.argmin(mask))
        deaths_ref.append(mask[j])
        in_tree[j] = True
        mind = np.minimum(mind, D[j])
    deaths_ref = np.sort(np.asarray(deaths_ref))
    deaths_ker = np.sort(np.asarray(dgms[0][: n - 1, 1]))
    assert np.allclose(deaths_ker, deaths_ref, rtol=1e-3, atol=1e-3)

    print("KERNEL_OK")
</pallas_src>

<mosaic_0001>
module attributes {stable_mosaic.version = 11 : i64} {
  func.func @_rips_kernel(%arg0: memref<128x2xf32, #tpu.memory_space<vmem>>, %arg1: memref<1x128xf32, #tpu.memory_space<vmem>>, %arg2: memref<128x128xf32, #tpu.memory_space<vmem>>) attributes {dimension_semantics = [], scalar_prefetch = 0 : i64, scratch_operands = 1 : i64, tpu.core_type = #tpu.core_type<tc>} {
    %c0 = arith.constant 0 : index
    %c0_0 = arith.constant 0 : index
    %0 = vector.load %arg0[%c0, %c0_0] : memref<128x2xf32, #tpu.memory_space<vmem>>, vector<128x2xf32>
    %1 = arith.mulf %0, %0 : vector<128x2xf32>
    %cst = arith.constant dense<0.000000e+00> : vector<128xf32>
    %2 = vector.multi_reduction <add>, %1, %cst [1] : vector<128x2xf32> to vector<128xf32>
    %3 = vector.shape_cast %2 : vector<128xf32> to vector<128x1xf32>
    %cst_1 = arith.constant dense<0.000000e+00> : vector<128x128xf32>
    %4 = tpu.matmul %0, %0, %cst_1 {dimension_numbers = #tpu.dot_dimension_numbers<[1], [1], [0], [0], [0, 0, 1, 0], [], []>} : vector<128x2xf32>, vector<128x2xf32>, vector<128x128xf32> -> vector<128x128xf32>
    %5 = tpu.transpose %3, [1, 0] : vector<128x1xf32> -> vector<1x128xf32>
    %6 = vector.broadcast %3 : vector<128x1xf32> to vector<128x128xf32>
    %7 = vector.broadcast %5 : vector<1x128xf32> to vector<128x128xf32>
    %8 = arith.addf %6, %7 : vector<128x128xf32>
    %cst_2 = arith.constant 2.000000e+00 : f32
    %9 = vector.broadcast %cst_2 : f32 to vector<128x128xf32>
    %10 = arith.mulf %9, %4 : vector<128x128xf32>
    %11 = arith.subf %8, %10 : vector<128x128xf32>
    %c0_3 = arith.constant 0 : index
    %c0_4 = arith.constant 0 : index
    %12 = vector.load %arg2[%c0_3, %c0_4] : memref<128x128xf32, #tpu.memory_space<vmem>>, vector<128x128xf32>
    tpu.vector_store %arg2[%c0_3, %c0_4], %11 {strides = array<i32>} : memref<128x128xf32, #tpu.memory_space<vmem>>, vector<128x128xf32>,
    %13 = tpu.iota {dimensions = array<i32: 1>} : vector<1x128xi32>
    %c0_i32 = arith.constant 0 : i32
    %14 = vector.broadcast %c0_i32 : i32 to vector<1x128xi32>
    %15 = arith.cmpi eq, %13, %14 : vector<1x128xi32>
    %c16_i32 = arith.constant 16 : i32
    %16 = vector.broadcast %c16_i32 : i32 to vector<1x128xi32>
    %17 = arith.cmpi sge, %13, %16 : vector<1x128xi32>
    %18 = arith.ori %15, %17 : vector<1x128xi1>
    %c1_i32 = arith.constant 1 : i32
    %c0_i32_5 = arith.constant 0 : i32
    %19 = vector.broadcast %c1_i32 : i32 to vector<1x128xi32>
    %20 = vector.broadcast %c0_i32_5 : i32 to vector<1x128xi32>
    %21 = arith.select %18, %19, %20 : vector<1x128xi1>, vector<1x128xi32>
    %c0_6 = arith.constant 0 : index
    %c0_7 = arith.constant 0 : index
    %22 = vector.load %arg2[%c0_6, %c0_7] : memref<128x128xf32, #tpu.memory_space<vmem>>, vector<1x128xf32>
    %cst_8 = arith.constant 0.000000e+00 : f32
    %23 = vector.broadcast %cst_8 : f32 to vector<1x128xf32>
    %cst_9 = arith.constant 1.000000e+30 : f32
    %c0_i32_10 = arith.constant 0 : i32
    %c0_i32_11 = arith.constant 0 : i32
    %24 = vector.broadcast %c0_i32_11 : i32 to vector<1x128xi32>
    %25 = arith.cmpi sgt, %21, %24 : vector<1x128xi32>
    %26 = vector.broadcast %cst_9 : f32 to vector<1x128xf32>
    %27 = arith.select %25, %26, %22 : vector<1x128xi1>, vector<1x128xf32>
    %28 = vector.shape_cast %27 : vector<1x128xf32> to vector<1x1x128xf32>
    %cst_12 = arith.constant dense<0x7F800000> : vector<1xf32>
    %29 = vector.multi_reduction <minimumf>, %28, %cst_12 [1, 2] : vector<1x1x128xf32> to vector<1xf32>
    %30 = vector.shape_cast %29 : vector<1xf32> to vector<1x1x1xf32>
    %31 = vector.extract %30[0, 0, 0] : f32 from vector<1x1x1xf32>
    %32 = vector.broadcast %31 : f32 to vector<1x128xf32>
    %33 = arith.cmpf oeq, %27, %32 : vector<1x128xf32>
    %c128_i32 = arith.constant 128 : i32
    %34 = vector.broadcast %c128_i32 : i32 to vector<1x128xi32>
    %35 = arith.select %33, %13, %34 : vector<1x128xi1>, vector<1x128xi32>
    %36 = vector.shape_cast %35 : vector<1x128xi32> to vector<1x1x128xi32>
    %cst_13 = arith.constant dense<2147483647> : vector<1xi32>
    %37 = vector.multi_reduction <minsi>, %36, %cst_13 [1, 2] : vector<1x1x128xi32> to vector<1xi32>
    %38 = vector.shape_cast %37 : vector<1xi32> to vector<1x1x1xi32>
    %39 = vector.extract %38[0, 0, 0] : i32 from vector<1x1x1xi32>
    %40 = vector.broadcast %c0_i32_10 : i32 to vector<1x128xi32>
    %41 = arith.cmpi eq, %13, %40 : vector<1x128xi32>
    %42 = vector.broadcast %31 : f32 to vector<1x128xf32>
    %43 = arith.select %41, %42, %23 : vector<1x128xi1>, vector<1x128xf32>
    %44 = vector.broadcast %39 : i32 to vector<1x128xi32>
    %45 = arith.cmpi eq, %13, %44 : vector<1x128xi32>
    %c1_i32_14 = arith.constant 1 : i32
    %46 = vector.broadcast %c1_i32_14 : i32 to vector<1x128xi32>
    %47 = arith.select %45, %46, %21 : vector<1x128xi1>, vector<1x128xi32>
    %48 = arith.index_cast %39 : i32 to index
    %c0_15 = arith.constant 0 : index
    %49 = vector.load %arg2[%48, %c0_15] : memref<128x128xf32, #tpu.memory_space<vmem>>, vector<1x128xf32>
    %50 = arith.minimumf %22, %49 : vector<1x128xf32>
    %c1_i32_16 = arith.constant 1 : i32
    %c0_i32_17 = arith.constant 0 : i32
    %51 = vector.broadcast %c0_i32_17 : i32 to vector<1x128xi32>
    %52 = arith.cmpi sgt, %47, %51 : vector<1x128xi32>
    %53 = vector.broadcast %cst_9 : f32 to vector<1x128xf32>
    %54 = arith.select %52, %53, %50 : vector<1x128xi1>, vector<1x128xf32>
    %55 = vector.shape_cast %54 : vector<1x128xf32> to vector<1x1x128xf32>
    %cst_18 = arith.constant dense<0x7F800000> : vector<1xf32>
    %56 = vector.multi_reduction <minimumf>, %55, %cst_18 [1, 2] : vector<1x1x128xf32> to vector<1xf32>
    %57 = vector.shape_cast %56 : vector<1xf32> to vector<1x1x1xf32>
    %58 = vector.extract %57[0, 0, 0] : f32 from vector<1x1x1xf32>
    %59 = vector.broadcast %58 : f32 to vector<1x128xf32>
    %60 = arith.cmpf oeq, %54, %59 : vector<1x128xf32>
    %c128_i32_19 = arith.constant 128 : i32
    %61 = vector.broadcast %c128_i32_19 : i32 to vector<1x128xi32>
    %62 = arith.select %60, %13, %61 : vector<1x128xi1>, vector<1x128xi32>
    %63 = vector.shape_cast %62 : vector<1x128xi32> to vector<1x1x128xi32>
    %cst_20 = arith.constant dense<2147483647> : vector<1xi32>
    %64 = vector.multi_reduction <minsi>, %63, %cst_20 [1, 2] : vector<1x1x128xi32> to vector<1xi32>
    %65 = vector.shape_cast %64 : vector<1xi32> to vector<1x1x1xi32>
    %66 = vector.extract %65[0, 0, 0] : i32 from vector<1x1x1xi32>
    %67 = vector.broadcast %c1_i32_16 : i32 to vector<1x128xi32>
    %68 = arith.cmpi eq, %13, %67 : vector<1x128xi32>
    %69 = vector.broadcast %58 : f32 to vector<1x128xf32>
    %70 = arith.select %68, %69, %43 : vector<1x128xi1>, vector<1x128xf32>
    %71 = vector.broadcast %66 : i32 to vector<1x128xi32>
    %72 = arith.cmpi eq, %13, %71 : vector<1x128xi32>
    %c1_i32_21 = arith.constant 1 : i32
    %73 = vector.broadcast %c1_i32_21 : i32 to vector<1x128xi32>
    %74 = arith.select %72, %73, %47 : vector<1x128xi1>, vector<1x128xi32>
    %75 = arith.index_cast %66 : i32 to index
    %c0_22 = arith.constant 0 : index
    %76 = vector.load %arg2[%75, %c0_22] : memref<128x128xf32, #tpu.memory_space<vmem>>, vector<1x128xf32>
    %77 = arith.minimumf %50, %76 : vector<1x128xf32>
    %c2_i32 = arith.constant 2 : i32
    %c0_i32_23 = arith.constant 0 : i32
    %78 = vector.broadcast %c0_i32_23 : i32 to vector<1x128xi32>
    %79 = arith.cmpi sgt, %74, %78 : vector<1x128xi32>
    %80 = vector.broadcast %cst_9 : f32 to vector<1x128xf32>
    %81 = arith.select %79, %80, %77 : vector<1x128xi1>, vector<1x128xf32>
    %82 = vector.shape_cast %81 : vector<1x128xf32> to vector<1x1x128xf32>
    %cst_24 = arith.constant dense<0x7F800000> : vector<1xf32>
    %83 = vector.multi_reduction <minimumf>, %82, %cst_24 [1, 2] : vector<1x1x128xf32> to vector<1xf32>
    %84 = vector.shape_cast %83 : vector<1xf32> to vector<1x1x1xf32>
    %85 = vector.extract %84[0, 0, 0] : f32 from vector<1x1x1xf32>
    %86 = vector.broadcast %85 : f32 to vector<1x128xf32>
    %87 = arith.cmpf oeq, %81, %86 : vector<1x128xf32>
    %c128_i32_25 = arith.constant 128 : i32
    %88 = vector.broadcast %c128_i32_25 : i32 to vector<1x128xi32>
    %89 = arith.select %87, %13, %88 : vector<1x128xi1>, vector<1x128xi32>
    %90 = vector.shape_cast %89 : vector<1x128xi32> to vector<1x1x128xi32>
    %cst_26 = arith.constant dense<2147483647> : vector<1xi32>
    %91 = vector.multi_reduction <minsi>, %90, %cst_26 [1, 2] : vector<1x1x128xi32> to vector<1xi32>
    %92 = vector.shape_cast %91 : vector<1xi32> to vector<1x1x1xi32>
    %93 = vector.extract %92[0, 0, 0] : i32 from vector<1x1x1xi32>
    %94 = vector.broadcast %c2_i32 : i32 to vector<1x128xi32>
    %95 = arith.cmpi eq, %13, %94 : vector<1x128xi32>
    %96 = vector.broadcast %85 : f32 to vector<1x128xf32>
    %97 = arith.select %95, %96, %70 : vector<1x128xi1>, vector<1x128xf32>
    %98 = vector.broadcast %93 : i32 to vector<1x128xi32>
    %99 = arith.cmpi eq, %13, %98 : vector<1x128xi32>
    %c1_i32_27 = arith.constant 1 : i32
    %100 = vector.broadcast %c1_i32_27 : i32 to vector<1x128xi32>
    %101 = arith.select %99, %100, %74 : vector<1x128xi1>, vector<1x128xi32>
    %102 = arith.index_cast %93 : i32 to index
    %c0_28 = arith.constant 0 : index
    %103 = vector.load %arg2[%102, %c0_28] : memref<128x128xf32, #tpu.memory_space<vmem>>, vector<1x128xf32>
    %104 = arith.minimumf %77, %103 : vector<1x128xf32>
    %c3_i32 = arith.constant 3 : i32
    %c0_i32_29 = arith.constant 0 : i32
    %105 = vector.broadcast %c0_i32_29 : i32 to vector<1x128xi32>
    %106 = arith.cmpi sgt, %101, %105 : vector<1x128xi32>
    %107 = vector.broadcast %cst_9 : f32 to vector<1x128xf32>
    %108 = arith.select %106, %107, %104 : vector<1x128xi1>, vector<1x128xf32>
    %109 = vector.shape_cast %108 : vector<1x128xf32> to vector<1x1x128xf32>
    %cst_30 = arith.constant dense<0x7F800000> : vector<1xf32>
    %110 = vector.multi_reduction <minimumf>, %109, %cst_30 [1, 2] : vector<1x1x128xf32> to vector<1xf32>
    %111 = vector.shape_cast %110 : vector<1xf32> to vector<1x1x1xf32>
    %112 = vector.extract %111[0, 0, 0] : f32 from vector<1x1x1xf32>
    %113 = vector.broadcast %112 : f32 to vector<1x128xf32>
    %114 = arith.cmpf oeq, %108, %113 : vector<1x128xf32>
    %c128_i32_31 = arith.constant 128 : i32
    %115 = vector.broadcast %c128_i32_31 : i32 to vector<1x128xi32>
    %116 = arith.select %114, %13, %115 : vector<1x128xi1>, vector<1x128xi32>
    %117 = vector.shape_cast %116 : vector<1x128xi32> to vector<1x1x128xi32>
    %cst_32 = arith.constant dense<2147483647> : vector<1xi32>
    %118 = vector.multi_reduction <minsi>, %117, %cst_32 [1, 2] : vector<1x1x128xi32> to vector<1xi32>
    %119 = vector.shape_cast %118 : vector<1xi32> to vector<1x1x1xi32>
    %120 = vector.extract %119[0, 0, 0] : i32 from vector<1x1x1xi32>
    %121 = vector.broadcast %c3_i32 : i32 to vector<1x128xi32>
    %122 = arith.cmpi eq, %13, %121 : vector<1x128xi32>
    %123 = vector.broadcast %112 : f32 to vector<1x128xf32>
    %124 = arith.select %122, %123, %97 : vector<1x128xi1>, vector<1x128xf32>
    %125 = vector.broadcast %120 : i32 to vector<1x128xi32>
    %126 = arith.cmpi eq, %13, %125 : vector<1x128xi32>
    %c1_i32_33 = arith.constant 1 : i32
    %127 = vector.broadcast %c1_i32_33 : i32 to vector<1x128xi32>
    %128 = arith.select %126, %127, %101 : vector<1x128xi1>, vector<1x128xi32>
    %129 = arith.index_cast %120 : i32 to index
    %c0_34 = arith.constant 0 : index
    %130 = vector.load %arg2[%129, %c0_34] : memref<128x128xf32, #tpu.memory_space<vmem>>, vector<1x128xf32>
    %131 = arith.minimumf %104, %130 : vector<1x128xf32>
    %c4_i32 = arith.constant 4 : i32
    %c0_i32_35 = arith.constant 0 : i32
    %132 = vector.broadcast %c0_i32_35 : i32 to vector<1x128xi32>
    %133 = arith.cmpi sgt, %128, %132 : vector<1x128xi32>
    %134 = vector.broadcast %cst_9 : f32 to vector<1x128xf32>
    %135 = arith.select %133, %134, %131 : vector<1x128xi1>, vector<1x128xf32>
    %136 = vector.shape_cast %135 : vector<1x128xf32> to vector<1x1x128xf32>
    %cst_36 = arith.constant dense<0x7F800000> : vector<1xf32>
    %137 = vector.multi_reduction <minimumf>, %136, %cst_36 [1, 2] : vector<1x1x128xf32> to vector<1xf32>
    %138 = vector.shape_cast %137 : vector<1xf32> to vector<1x1x1xf32>
    %139 = vector.extract %138[0, 0, 0] : f32 from vector<1x1x1xf32>
    %140 = vector.broadcast %139 : f32 to vector<1x128xf32>
    %141 = arith.cmpf oeq, %135, %140 : vector<1x128xf32>
    %c128_i32_37 = arith.constant 128 : i32
    %142 = vector.broadcast %c128_i32_37 : i32 to vector<1x128xi32>
    %143 = arith.select %141, %13, %142 : vector<1x128xi1>, vector<1x128xi32>
    %144 = vector.shape_cast %143 : vector<1x128xi32> to vector<1x1x128xi32>
    %cst_38 = arith.constant dense<2147483647> : vector<1xi32>
    %145 = vector.multi_reduction <minsi>, %144, %cst_38 [1, 2] : vector<1x1x128xi32> to vector<1xi32>
    %146 = vector.shape_cast %145 : vector<1xi32> to vector<1x1x1xi32>
    %147 = vector.extract %146[0, 0, 0] : i32 from vector<1x1x1xi32>
    %148 = vector.broadcast %c4_i32 : i32 to vector<1x128xi32>
    %149 = arith.cmpi eq, %13, %148 : vector<1x128xi32>
    %150 = vector.broadcast %139 : f32 to vector<1x128xf32>
    %151 = arith.select %149, %150, %124 : vector<1x128xi1>, vector<1x128xf32>
    %152 = vector.broadcast %147 : i32 to vector<1x128xi32>
    %153 = arith.cmpi eq, %13, %152 : vector<1x128xi32>
    %c1_i32_39 = arith.constant 1 : i32
    %154 = vector.broadcast %c1_i32_39 : i32 to vector<1x128xi32>
    %155 = arith.select %153, %154, %128 : vector<1x128xi1>, vector<1x128xi32>
    %156 = arith.index_cast %147 : i32 to index
    %c0_40 = arith.constant 0 : index
    %157 = vector.load %arg2[%156, %c0_40] : memref<128x128xf32, #tpu.memory_space<vmem>>, vector<1x128xf32>
    %158 = arith.minimumf %131, %157 : vector<1x128xf32>
    %c5_i32 = arith.constant 5 : i32
    %c0_i32_41 = arith.constant 0 : i32
    %159 = vector.broadcast %c0_i32_41 : i32 to vector<1x128xi32>
    %160 = arith.cmpi sgt, %155, %159 : vector<1x128xi32>
    %161 = vector.broadcast %cst_9 : f32 to vector<1x128xf32>
    %162 = arith.select %160, %161, %158 : vector<1x128xi1>, vector<1x128xf32>
    %163 = vector.shape_cast %162 : vector<1x128xf32> to vector<1x1x128xf32>
    %cst_42 = arith.constant dense<0x7F800000> : vector<1xf32>
    %164 = vector.multi_reduction <minimumf>, %163, %cst_42 [1, 2] : vector<1x1x128xf32> to vector<1xf32>
    %165 = vector.shape_cast %164 : vector<1xf32> to vector<1x1x1xf32>
    %166 = vector.extract %165[0, 0, 0] : f32 from vector<1x1x1xf32>
    %167 = vector.broadcast %166 : f32 to vector<1x128xf32>
    %168 = arith.cmpf oeq, %162, %167 : vector<1x128xf32>
    %c128_i32_43 = arith.constant 128 : i32
    %169 = vector.broadcast %c128_i32_43 : i32 to vector<1x128xi32>
    %170 = arith.select %168, %13, %169 : vector<1x128xi1>, vector<1x128xi32>
    %171 = vector.shape_cast %170 : vector<1x128xi32> to vector<1x1x128xi32>
    %cst_44 = arith.constant dense<2147483647> : vector<1xi32>
    %172 = vector.multi_reduction <minsi>, %171, %cst_44 [1, 2] : vector<1x1x128xi32> to vector<1xi32>
    %173 = vector.shape_cast %172 : vector<1xi32> to vector<1x1x1xi32>
    %174 = vector.extract %173[0, 0, 0] : i32 from vector<1x1x1xi32>
    %175 = vector.broadcast %c5_i32 : i32 to vector<1x128xi32>
    %176 = arith.cmpi eq, %13, %175 : vector<1x128xi32>
    %177 = vector.broadcast %166 : f32 to vector<1x128xf32>
    %178 = arith.select %176, %177, %151 : vector<1x128xi1>, vector<1x128xf32>
    %179 = vector.broadcast %174 : i32 to vector<1x128xi32>
    %180 = arith.cmpi eq, %13, %179 : vector<1x128xi32>
    %c1_i32_45 = arith.constant 1 : i32
    %181 = vector.broadcast %c1_i32_45 : i32 to vector<1x128xi32>
    %182 = arith.select %180, %181, %155 : vector<1x128xi1>, vector<1x128xi32>
    %183 = arith.index_cast %174 : i32 to index
    %c0_46 = arith.constant 0 : index
    %184 = vector.load %arg2[%183, %c0_46] : memref<128x128xf32, #tpu.memory_space<vmem>>, vector<1x128xf32>
    %185 = arith.minimumf %158, %184 : vector<1x128xf32>
    %c6_i32 = arith.constant 6 : i32
    %c0_i32_47 = arith.constant 0 : i32
    %186 = vector.broadcast %c0_i32_47 : i32 to vector<1x128xi32>
    %187 = arith.cmpi sgt, %182, %186 : vector<1x128xi32>
    %188 = vector.broadcast %cst_9 : f32 to vector<1x128xf32>
    %189 = arith.select %187, %188, %185 : vector<1x128xi1>, vector<1x128xf32>
    %190 = vector.shape_cast %189 : vector<1x128xf32> to vector<1x1x128xf32>
    %cst_48 = arith.constant dense<0x7F800000> : vector<1xf32>
    %191 = vector.multi_reduction <minimumf>, %190, %cst_48 [1, 2] : vector<1x1x128xf32> to vector<1xf32>
    %192 = vector.shape_cast %191 : vector<1xf32> to vector<1x1x1xf32>
    %193 = vector.extract %192[0, 0, 0] : f32 from vector<1x1x1xf32>
    %194 = vector.broadcast %193 : f32 to vector<1x128xf32>
    %195 = arith.cmpf oeq, %189, %194 : vector<1x128xf32>
    %c128_i32_49 = arith.constant 128 : i32
    %196 = vector.broadcast %c128_i32_49 : i32 to vector<1x128xi32>
    %197 = arith.select %195, %13, %196 : vector<1x128xi1>, vector<1x128xi32>
    %198 = vector.shape_cast %197 : vector<1x128xi32> to vector<1x1x128xi32>
    %cst_50 = arith.constant dense<2147483647> : vector<1xi32>
    %199 = vector.multi_reduction <minsi>, %198, %cst_50 [1, 2] : vector<1x1x128xi32> to vector<1xi32>
    %200 = vector.shape_cast %199 : vector<1xi32> to vector<1x1x1xi32>
    %201 = vector.extract %200[0, 0, 0] : i32 from vector<1x1x1xi32>
    %202 = vector.broadcast %c6_i32 : i32 to vector<1x128xi32>
    %203 = arith.cmpi eq, %13, %202 : vector<1x128xi32>
    %204 = vector.broadcast %193 : f32 to vector<1x128xf32>
    %205 = arith.select %203, %204, %178 : vector<1x128xi1>, vector<1x128xf32>
    %206 = vector.broadcast %201 : i32 to vector<1x128xi32>
    %207 = arith.cmpi eq, %13, %206 : vector<1x128xi32>
    %c1_i32_51 = arith.constant 1 : i32
    %208 = vector.broadcast %c1_i32_51 : i32 to vector<1x128xi32>
    %209 = arith.select %207, %208, %182 : vector<1x128xi1>, vector<1x128xi32>
    %210 = arith.index_cast %201 : i32 to index
    %c0_52 = arith.constant 0 : index
    %211 = vector.load %arg2[%210, %c0_52] : memref<128x128xf32, #tpu.memory_space<vmem>>, vector<1x128xf32>
    %212 = arith.minimumf %185, %211 : vector<1x128xf32>
    %c7_i32 = arith.constant 7 : i32
    %c0_i32_53 = arith.constant 0 : i32
    %213 = vector.broadcast %c0_i32_53 : i32 to vector<1x128xi32>
    %214 = arith.cmpi sgt, %209, %213 : vector<1x128xi32>
    %215 = vector.broadcast %cst_9 : f32 to vector<1x128xf32>
    %216 = arith.select %214, %215, %212 : vector<1x128xi1>, vector<1x128xf32>
    %217 = vector.shape_cast %216 : vector<1x128xf32> to vector<1x1x128xf32>
    %cst_54 = arith.constant dense<0x7F800000> : vector<1xf32>
    %218 = vector.multi_reduction <minimumf>, %217, %cst_54 [1, 2] : vector<1x1x128xf32> to vector<1xf32>
    %219 = vector.shape_cast %218 : vector<1xf32> to vector<1x1x1xf32>
    %220 = vector.extract %219[0, 0, 0] : f32 from vector<1x1x1xf32>
    %221 = vector.broadcast %220 : f32 to vector<1x128xf32>
    %222 = arith.cmpf oeq, %216, %221 : vector<1x128xf32>
    %c128_i32_55 = arith.constant 128 : i32
    %223 = vector.broadcast %c128_i32_55 : i32 to vector<1x128xi32>
    %224 = arith.select %222, %13, %223 : vector<1x128xi1>, vector<1x128xi32>
    %225 = vector.shape_cast %224 : vector<1x128xi32> to vector<1x1x128xi32>
    %cst_56 = arith.constant dense<2147483647> : vector<1xi32>
    %226 = vector.multi_reduction <minsi>, %225, %cst_56 [1, 2] : vector<1x1x128xi32> to vector<1xi32>
    %227 = vector.shape_cast %226 : vector<1xi32> to vector<1x1x1xi32>
    %228 = vector.extract %227[0, 0, 0] : i32 from vector<1x1x1xi32>
    %229 = vector.broadcast %c7_i32 : i32 to vector<1x128xi32>
    %230 = arith.cmpi eq, %13, %229 : vector<1x128xi32>
    %231 = vector.broadcast %220 : f32 to vector<1x128xf32>
    %232 = arith.select %230, %231, %205 : vector<1x128xi1>, vector<1x128xf32>
    %233 = vector.broadcast %228 : i32 to vector<1x128xi32>
    %234 = arith.cmpi eq, %13, %233 : vector<1x128xi32>
    %c1_i32_57 = arith.constant 1 : i32
    %235 = vector.broadcast %c1_i32_57 : i32 to vector<1x128xi32>
    %236 = arith.select %234, %235, %209 : vector<1x128xi1>, vector<1x128xi32>
    %237 = arith.index_cast %228 : i32 to index
    %c0_58 = arith.constant 0 : index
    %238 = vector.load %arg2[%237, %c0_58] : memref<128x128xf32, #tpu.memory_space<vmem>>, vector<1x128xf32>
    %239 = arith.minimumf %212, %238 : vector<1x128xf32>
    %c8_i32 = arith.constant 8 : i32
    %c0_i32_59 = arith.constant 0 : i32
    %240 = vector.broadcast %c0_i32_59 : i32 to vector<1x128xi32>
    %241 = arith.cmpi sgt, %236, %240 : vector<1x128xi32>
    %242 = vector.broadcast %cst_9 : f32 to vector<1x128xf32>
    %243 = arith.select %241, %242, %239 : vector<1x128xi1>, vector<1x128xf32>
    %244 = vector.shape_cast %243 : vector<1x128xf32> to vector<1x1x128xf32>
    %cst_60 = arith.constant dense<0x7F800000> : vector<1xf32>
    %245 = vector.multi_reduction <minimumf>, %244, %cst_60 [1, 2] : vector<1x1x128xf32> to vector<1xf32>
    %246 = vector.shape_cast %245 : vector<1xf32> to vector<1x1x1xf32>
    %247 = vector.extract %246[0, 0, 0] : f32 from vector<1x1x1xf32>
    %248 = vector.broadcast %247 : f32 to vector<1x128xf32>
    %249 = arith.cmpf oeq, %243, %248 : vector<1x128xf32>
    %c128_i32_61 = arith.constant 128 : i32
    %250 = vector.broadcast %c128_i32_61 : i32 to vector<1x128xi32>
    %251 = arith.select %249, %13, %250 : vector<1x128xi1>, vector<1x128xi32>
    %252 = vector.shape_cast %251 : vector<1x128xi32> to vector<1x1x128xi32>
    %cst_62 = arith.constant dense<2147483647> : vector<1xi32>
    %253 = vector.multi_reduction <minsi>, %252, %cst_62 [1, 2] : vector<1x1x128xi32> to vector<1xi32>
    %254 = vector.shape_cast %253 : vector<1xi32> to vector<1x1x1xi32>
    %255 = vector.extract %254[0, 0, 0] : i32 from vector<1x1x1xi32>
    %256 = vector.broadcast %c8_i32 : i32 to vector<1x128xi32>
    %257 = arith.cmpi eq, %13, %256 : vector<1x128xi32>
    %258 = vector.broadcast %247 : f32 to vector<1x128xf32>
    %259 = arith.select %257, %258, %232 : vector<1x128xi1>, vector<1x128xf32>
    %260 = vector.broadcast %255 : i32 to vector<1x128xi32>
    %261 = arith.cmpi eq, %13, %260 : vector<1x128xi32>
    %c1_i32_63 = arith.constant 1 : i32
    %262 = vector.broadcast %c1_i32_63 : i32 to vector<1x128xi32>
    %263 = arith.select %261, %262, %236 : vector<1x128xi1>, vector<1x128xi32>
    %264 = arith.index_cast %255 : i32 to index
    %c0_64 = arith.constant 0 : index
    %265 = vector.load %arg2[%264, %c0_64] : memref<128x128xf32, #tpu.memory_space<vmem>>, vector<1x128xf32>
    %266 = arith.minimumf %239, %265 : vector<1x128xf32>
    %c9_i32 = arith.constant 9 : i32
    %c0_i32_65 = arith.constant 0 : i32
    %267 = vector.broadcast %c0_i32_65 : i32 to vector<1x128xi32>
    %268 = arith.cmpi sgt, %263, %267 : vector<1x128xi32>
    %269 = vector.broadcast %cst_9 : f32 to vector<1x128xf32>
    %270 = arith.select %268, %269, %266 : vector<1x128xi1>, vector<1x128xf32>
    %271 = vector.shape_cast %270 : vector<1x128xf32> to vector<1x1x128xf32>
    %cst_66 = arith.constant dense<0x7F800000> : vector<1xf32>
    %272 = vector.multi_reduction <minimumf>, %271, %cst_66 [1, 2] : vector<1x1x128xf32> to vector<1xf32>
    %273 = vector.shape_cast %272 : vector<1xf32> to vector<1x1x1xf32>
    %274 = vector.extract %273[0, 0, 0] : f32 from vector<1x1x1xf32>
    %275 = vector.broadcast %274 : f32 to vector<1x128xf32>
    %276 = arith.cmpf oeq, %270, %275 : vector<1x128xf32>
    %c128_i32_67 = arith.constant 128 : i32
    %277 = vector.broadcast %c128_i32_67 : i32 to vector<1x128xi32>
    %278 = arith.select %276, %13, %277 : vector<1x128xi1>, vector<1x128xi32>
    %279 = vector.shape_cast %278 : vector<1x128xi32> to vector<1x1x128xi32>
    %cst_68 = arith.constant dense<2147483647> : vector<1xi32>
    %280 = vector.multi_reduction <minsi>, %279, %cst_68 [1, 2] : vector<1x1x128xi32> to vector<1xi32>
    %281 = vector.shape_cast %280 : vector<1xi32> to vector<1x1x1xi32>
    %282 = vector.extract %281[0, 0, 0] : i32 from vector<1x1x1xi32>
    %283 = vector.broadcast %c9_i32 : i32 to vector<1x128xi32>
    %284 = arith.cmpi eq, %13, %283 : vector<1x128xi32>
    %285 = vector.broadcast %274 : f32 to vector<1x128xf32>
    %286 = arith.select %284, %285, %259 : vector<1x128xi1>, vector<1x128xf32>
    %287 = vector.broadcast %282 : i32 to vector<1x128xi32>
    %288 = arith.cmpi eq, %13, %287 : vector<1x128xi32>
    %c1_i32_69 = arith.constant 1 : i32
    %289 = vector.broadcast %c1_i32_69 : i32 to vector<1x128xi32>
    %290 = arith.select %288, %289, %263 : vector<1x128xi1>, vector<1x128xi32>
    %291 = arith.index_cast %282 : i32 to index
    %c0_70 = arith.constant 0 : index
    %292 = vector.load %arg2[%291, %c0_70] : memref<128x128xf32, #tpu.memory_space<vmem>>, vector<1x128xf32>
    %293 = arith.minimumf %266, %292 : vector<1x128xf32>
    %c10_i32 = arith.constant 10 : i32
    %c0_i32_71 = arith.constant 0 : i32
    %294 = vector.broadcast %c0_i32_71 : i32 to vector<1x128xi32>
    %295 = arith.cmpi sgt, %290, %294 : vector<1x128xi32>
    %296 = vector.broadcast %cst_9 : f32 to vector<1x128xf32>
    %297 = arith.select %295, %296, %293 : vector<1x128xi1>, vector<1x128xf32>
    %298 = vector.shape_cast %297 : vector<1x128xf32> to vector<1x1x128xf32>
    %cst_72 = arith.constant dense<0x7F800000> : vector<1xf32>
    %299 = vector.multi_reduction <minimumf>, %298, %cst_72 [1, 2] : vector<1x1x128xf32> to vector<1xf32>
    %300 = vector.shape_cast %299 : vector<1xf32> to vector<1x1x1xf32>
    %301 = vector.extract %300[0, 0, 0] : f32 from vector<1x1x1xf32>
    %302 = vector.broadcast %301 : f32 to vector<1x128xf32>
    %303 = arith.cmpf oeq, %297, %302 : vector<1x128xf32>
    %c128_i32_73 = arith.constant 128 : i32
    %304 = vector.broadcast %c128_i32_73 : i32 to vector<1x128xi32>
    %305 = arith.select %303, %13, %304 : vector<1x128xi1>, vector<1x128xi32>
    %306 = vector.shape_cast %305 : vector<1x128xi32> to vector<1x1x128xi32>
    %cst_74 = arith.constant dense<2147483647> : vector<1xi32>
    %307 = vector.multi_reduction <minsi>, %306, %cst_74 [1, 2] : vector<1x1x128xi32> to vector<1xi32>
    %308 = vector.shape_cast %307 : vector<1xi32> to vector<1x1x1xi32>
    %309 = vector.extract %308[0, 0, 0] : i32 from vector<1x1x1xi32>
    %310 = vector.broadcast %c10_i32 : i32 to vector<1x128xi32>
    %311 = arith.cmpi eq, %13, %310 : vector<1x128xi32>
    %312 = vector.broadcast %301 : f32 to vector<1x128xf32>
    %313 = arith.select %311, %312, %286 : vector<1x128xi1>, vector<1x128xf32>
    %314 = vector.broadcast %309 : i32 to vector<1x128xi32>
    %315 = arith.cmpi eq, %13, %314 : vector<1x128xi32>
    %c1_i32_75 = arith.constant 1 : i32
    %316 = vector.broadcast %c1_i32_75 : i32 to vector<1x128xi32>
    %317 = arith.select %315, %316, %290 : vector<1x128xi1>, vector<1x128xi32>
    %318 = arith.index_cast %309 : i32 to index
    %c0_76 = arith.constant 0 : index
    %319 = vector.load %arg2[%318, %c0_76] : memref<128x128xf32, #tpu.memory_space<vmem>>, vector<1x128xf32>
    %320 = arith.minimumf %293, %319 : vector<1x128xf32>
    %c11_i32 = arith.constant 11 : i32
    %c0_i32_77 = arith.constant 0 : i32
    %321 = vector.broadcast %c0_i32_77 : i32 to vector<1x128xi32>
    %322 = arith.cmpi sgt, %317, %321 : vector<1x128xi32>
    %323 = vector.broadcast %cst_9 : f32 to vector<1x128xf32>
    %324 = arith.select %322, %323, %320 : vector<1x128xi1>, vector<1x128xf32>
    %325 = vector.shape_cast %324 : vector<1x128xf32> to vector<1x1x128xf32>
    %cst_78 = arith.constant dense<0x7F800000> : vector<1xf32>
    %326 = vector.multi_reduction <minimumf>, %325, %cst_78 [1, 2] : vector<1x1x128xf32> to vector<1xf32>
    %327 = vector.shape_cast %326 : vector<1xf32> to vector<1x1x1xf32>
    %328 = vector.extract %327[0, 0, 0] : f32 from vector<1x1x1xf32>
    %329 = vector.broadcast %328 : f32 to vector<1x128xf32>
    %330 = arith.cmpf oeq, %324, %329 : vector<1x128xf32>
    %c128_i32_79 = arith.constant 128 : i32
    %331 = vector.broadcast %c128_i32_79 : i32 to vector<1x128xi32>
    %332 = arith.select %330, %13, %331 : vector<1x128xi1>, vector<1x128xi32>
    %333 = vector.shape_cast %332 : vector<1x128xi32> to vector<1x1x128xi32>
    %cst_80 = arith.constant dense<2147483647> : vector<1xi32>
    %334 = vector.multi_reduction <minsi>, %333, %cst_80 [1, 2] : vector<1x1x128xi32> to vector<1xi32>
    %335 = vector.shape_cast %334 : vector<1xi32> to vector<1x1x1xi32>
    %336 = vector.extract %335[0, 0, 0] : i32 from vector<1x1x1xi32>
    %337 = vector.broadcast %c11_i32 : i32 to vector<1x128xi32>
    %338 = arith.cmpi eq, %13, %337 : vector<1x128xi32>
    %339 = vector.broadcast %328 : f32 to vector<1x128xf32>
    %340 = arith.select %338, %339, %313 : vector<1x128xi1>, vector<1x128xf32>
    %341 = vector.broadcast %336 : i32 to vector<1x128xi32>
    %342 = arith.cmpi eq, %13, %341 : vector<1x128xi32>
    %c1_i32_81 = arith.constant 1 : i32
    %343 = vector.broadcast %c1_i32_81 : i32 to vector<1x128xi32>
    %344 = arith.select %342, %343, %317 : vector<1x128xi1>, vector<1x128xi32>
    %345 = arith.index_cast %336 : i32 to index
    %c0_82 = arith.constant 0 : index
    %346 = vector.load %arg2[%345, %c0_82] : memref<128x128xf32, #tpu.memory_space<vmem>>, vector<1x128xf32>
    %347 = arith.minimumf %320, %346 : vector<1x128xf32>
    %c12_i32 = arith.constant 12 : i32
    %c0_i32_83 = arith.constant 0 : i32
    %348 = vector.broadcast %c0_i32_83 : i32 to vector<1x128xi32>
    %349 = arith.cmpi sgt, %344, %348 : vector<1x128xi32>
    %350 = vector.broadcast %cst_9 : f32 to vector<1x128xf32>
    %351 = arith.select %349, %350, %347 : vector<1x128xi1>, vector<1x128xf32>
    %352 = vector.shape_cast %351 : vector<1x128xf32> to vector<1x1x128xf32>
    %cst_84 = arith.constant dense<0x7F800000> : vector<1xf32>
    %353 = vector.multi_reduction <minimumf>, %352, %cst_84 [1, 2] : vector<1x1x128xf32> to vector<1xf32>
    %354 = vector.shape_cast %353 : vector<1xf32> to vector<1x1x1xf32>
    %355 = vector.extract %354[0, 0, 0] : f32 from vector<1x1x1xf32>
    %356 = vector.broadcast %355 : f32 to vector<1x128xf32>
    %357 = arith.cmpf oeq, %351, %356 : vector<1x128xf32>
    %c128_i32_85 = arith.constant 128 : i32
    %358 = vector.broadcast %c128_i32_85 : i32 to vector<1x128xi32>
    %359 = arith.select %357, %13, %358 : vector<1x128xi1>, vector<1x128xi32>
    %360 = vector.shape_cast %359 : vector<1x128xi32> to vector<1x1x128xi32>
    %cst_86 = arith.constant dense<2147483647> : vector<1xi32>
    %361 = vector.multi_reduction <minsi>, %360, %cst_86 [1, 2] : vector<1x1x128xi32> to vector<1xi32>
    %362 = vector.shape_cast %361 : vector<1xi32> to vector<1x1x1xi32>
    %363 = vector.extract %362[0, 0, 0] : i32 from vector<1x1x1xi32>
    %364 = vector.broadcast %c12_i32 : i32 to vector<1x128xi32>
    %365 = arith.cmpi eq, %13, %364 : vector<1x128xi32>
    %366 = vector.broadcast %355 : f32 to vector<1x128xf32>
    %367 = arith.select %365, %366, %340 : vector<1x128xi1>, vector<1x128xf32>
    %368 = vector.broadcast %363 : i32 to vector<1x128xi32>
    %369 = arith.cmpi eq, %13, %368 : vector<1x128xi32>
    %c1_i32_87 = arith.constant 1 : i32
    %370 = vector.broadcast %c1_i32_87 : i32 to vector<1x128xi32>
    %371 = arith.select %369, %370, %344 : vector<1x128xi1>, vector<1x128xi32>
    %372 = arith.index_cast %363 : i32 to index
    %c0_88 = arith.constant 0 : index
    %373 = vector.load %arg2[%372, %c0_88] : memref<128x128xf32, #tpu.memory_space<vmem>>, vector<1x128xf32>
    %374 = arith.minimumf %347, %373 : vector<1x128xf32>
    %c13_i32 = arith.constant 13 : i32
    %c0_i32_89 = arith.constant 0 : i32
    %375 = vector.broadcast %c0_i32_89 : i32 to vector<1x128xi32>
    %376 = arith.cmpi sgt, %371, %375 : vector<1x128xi32>
    %377 = vector.broadcast %cst_9 : f32 to vector<1x128xf32>
    %378 = arith.select %376, %377, %374 : vector<1x128xi1>, vector<1x128xf32>
    %379 = vector.shape_cast %378 : vector<1x128xf32> to vector<1x1x128xf32>
    %cst_90 = arith.constant dense<0x7F800000> : vector<1xf32>
    %380 = vector.multi_reduction <minimumf>, %379, %cst_90 [1, 2] : vector<1x1x128xf32> to vector<1xf32>
    %381 = vector.shape_cast %380 : vector<1xf32> to vector<1x1x1xf32>
    %382 = vector.extract %381[0, 0, 0] : f32 from vector<1x1x1xf32>
    %383 = vector.broadcast %382 : f32 to vector<1x128xf32>
    %384 = arith.cmpf oeq, %378, %383 : vector<1x128xf32>
    %c128_i32_91 = arith.constant 128 : i32
    %385 = vector.broadcast %c128_i32_91 : i32 to vector<1x128xi32>
    %386 = arith.select %384, %13, %385 : vector<1x128xi1>, vector<1x128xi32>
    %387 = vector.shape_cast %386 : vector<1x128xi32> to vector<1x1x128xi32>
    %cst_92 = arith.constant dense<2147483647> : vector<1xi32>
    %388 = vector.multi_reduction <minsi>, %387, %cst_92 [1, 2] : vector<1x1x128xi32> to vector<1xi32>
    %389 = vector.shape_cast %388 : vector<1xi32> to vector<1x1x1xi32>
    %390 = vector.extract %389[0, 0, 0] : i32 from vector<1x1x1xi32>
    %391 = vector.broadcast %c13_i32 : i32 to vector<1x128xi32>
    %392 = arith.cmpi eq, %13, %391 : vector<1x128xi32>
    %393 = vector.broadcast %382 : f32 to vector<1x128xf32>
    %394 = arith.select %392, %393, %367 : vector<1x128xi1>, vector<1x128xf32>
    %395 = vector.broadcast %390 : i32 to vector<1x128xi32>
    %396 = arith.cmpi eq, %13, %395 : vector<1x128xi32>
    %c1_i32_93 = arith.constant 1 : i32
    %397 = vector.broadcast %c1_i32_93 : i32 to vector<1x128xi32>
    %398 = arith.select %396, %397, %371 : vector<1x128xi1>, vector<1x128xi32>
    %399 = arith.index_cast %390 : i32 to index
    %c0_94 = arith.constant 0 : index
    %400 = vector.load %arg2[%399, %c0_94] : memref<128x128xf32, #tpu.memory_space<vmem>>, vector<1x128xf32>
    %401 = arith.minimumf %374, %400 : vector<1x128xf32>
    %c14_i32 = arith.constant 14 : i32
    %c0_i32_95 = arith.constant 0 : i32
    %402 = vector.broadcast %c0_i32_95 : i32 to vector<1x128xi32>
    %403 = arith.cmpi sgt, %398, %402 : vector<1x128xi32>
    %404 = vector.broadcast %cst_9 : f32 to vector<1x128xf32>
    %405 = arith.select %403, %404, %401 : vector<1x128xi1>, vector<1x128xf32>
    %406 = vector.shape_cast %405 : vector<1x128xf32> to vector<1x1x128xf32>
    %cst_96 = arith.constant dense<0x7F800000> : vector<1xf32>
    %407 = vector.multi_reduction <minimumf>, %406, %cst_96 [1, 2] : vector<1x1x128xf32> to vector<1xf32>
    %408 = vector.shape_cast %407 : vector<1xf32> to vector<1x1x1xf32>
    %409 = vector.extract %408[0, 0, 0] : f32 from vector<1x1x1xf32>
    %410 = vector.broadcast %409 : f32 to vector<1x128xf32>
    %411 = arith.cmpf oeq, %405, %410 : vector<1x128xf32>
    %c128_i32_97 = arith.constant 128 : i32
    %412 = vector.broadcast %c128_i32_97 : i32 to vector<1x128xi32>
    %413 = arith.select %411, %13, %412 : vector<1x128xi1>, vector<1x128xi32>
    %414 = vector.shape_cast %413 : vector<1x128xi32> to vector<1x1x128xi32>
    %cst_98 = arith.constant dense<2147483647> : vector<1xi32>
    %415 = vector.multi_reduction <minsi>, %414, %cst_98 [1, 2] : vector<1x1x128xi32> to vector<1xi32>
    %416 = vector.shape_cast %415 : vector<1xi32> to vector<1x1x1xi32>
    %417 = vector.extract %416[0, 0, 0] : i32 from vector<1x1x1xi32>
    %418 = vector.broadcast %c14_i32 : i32 to vector<1x128xi32>
    %419 = arith.cmpi eq, %13, %418 : vector<1x128xi32>
    %420 = vector.broadcast %409 : f32 to vector<1x128xf32>
    %421 = arith.select %419, %420, %394 : vector<1x128xi1>, vector<1x128xf32>
    %422 = vector.broadcast %417 : i32 to vector<1x128xi32>
    %423 = arith.cmpi eq, %13, %422 : vector<1x128xi32>
    %c1_i32_99 = arith.constant 1 : i32
    %424 = vector.broadcast %c1_i32_99 : i32 to vector<1x128xi32>
    %425 = arith.select %423, %424, %398 : vector<1x128xi1>, vector<1x128xi32>
    %426 = arith.index_cast %417 : i32 to index
    %c0_100 = arith.constant 0 : index
    %427 = vector.load %arg2[%426, %c0_100] : memref<128x128xf32, #tpu.memory_space<vmem>>, vector<1x128xf32>
    %428 = arith.minimumf %401, %427 : vector<1x128xf32>
    %c15_i32 = arith.constant 15 : i32
    %cst_101 = arith.constant 0.000000e+00 : f32
    %429 = vector.broadcast %cst_101 : f32 to vector<1x128xf32>
    %430 = arith.maximumf %421, %429 : vector<1x128xf32>
    %431 = math.sqrt %430 : vector<1x128xf32>
    %c0_102 = arith.constant 0 : index
    %c0_103 = arith.constant 0 : index
    %432 = vector.load %arg1[%c0_102, %c0_103] : memref<1x128xf32, #tpu.memory_space<vmem>>, vector<1x128xf32>
    tpu.vector_store %arg1[%c0_102, %c0_103], %431 {strides = array<i32>} : memref<1x128xf32, #tpu.memory_space<vmem>>, vector<1x128xf32>,
    return
  }
}

</mosaic_0001>

<bundles_post_ra>
// kernel: tpu_custom_call.1
= control target key start
LH: loop header
LB: loop body
LE: loop exit
PB: predicated region body
PF: predicated region fallthrough
CT: control target
= control target key end

     0   :  { %vm41_vm0 = vcmask 15360   ;;  %s1635_s0 = inlined_call_operand.vmem [shape: f32[128,2], index: 0, kind: input, shape index: {}]   ;;  %s1636_s1 = inlined_call_operand.hbm [shape: f32[1,128], index: 1, kind: output, shape index: {}]  }
   0x1   :  { %v1221_v0 = vld [vmem:[%s1635_s0] sm:$0xff]  ;;  %v1226_v1 = vld [vmem:[%s1635_s0 + $0x10] sm:$0xff]  ;;  %v1240_v5 = vld [vmem:[%s1635_s0 + $0x8] sm:$0xff] }
   0x2   :  { %v25_v2 = vmul.f32 %v1221_v0, %v1221_v0  ;;  %v27_v3 = vmul.f32 %v1226_v1, %v1226_v1  ;;  %v1235_v4 = vld [vmem:[%s1635_s0 + $0x20] sm:$0xff]  ;;  %v1245_v6 = vld [vmem:[%s1635_s0 + $0x18] sm:$0xff]  ;;  %v1254_v10 = vld [vmem:[%s1635_s0 + $0x28] sm:$0xff] }
   0x3   :  { %v29_v7 = vmul.f32 %v1235_v4, %v1235_v4 }
   0x4   :  { %v42_v8 = vsel %vm41_vm0, %v25_v2, 0.0  ;;  %v48_v9 = vsel %vm41_vm0, %v27_v3, 0.0 }
   0x5   :  { %6 = vsyncpa [#allocation4], 0  ;;  %43 = vadd.xlane.f32.xlu0 %v42_v8  ;;  %49 = vadd.xlane.f32.xlu1 %v48_v9  ;;  %v54_v11 = vsel %vm41_vm0, %v29_v7, 0.0  ;;  %v1260_v12 = vld [vmem:[%s1635_s0 + $0x78] sm:$0xff]  ;;  %v26_v13 = vmul.f32 %v1240_v5, %v1240_v5  ;;  %v28_v14 = vmul.f32 %v1245_v6, %v1245_v6  ;;  %v30_v15 = vmul.f32 %v1254_v10, %v1254_v10  ;;  %v1275_v16 = vld [vmem:[%s1635_s0 + $0x70] sm:$0xff] }
   0x6   :  { %55 = vadd.xlane.f32.xlu2 %v54_v11  ;;  %1071 = vmatpush.xpose.msk.msra.mxu2 %vm41_vm0, %v1260_v12  ;;  %v1289_v20 = vld [vmem:[%s1635_s0 + $0x38] sm:$0xff]  ;;  %v1294_v21 = vld [vmem:[%s1635_s0 + $0x30] sm:$0xff]  ;;  %v1303_v22 = vld [vmem:[%s1635_s0 + $0x40] sm:$0xff]  ;;  %v39_v42 = vmul.f32 %v1275_v16, %v1275_v16  ;;  %v40_v46 = vmul.f32 %v1260_v12, %v1260_v12  ;;  %vm309_vm4 = vcmask 1040384  }
   0x7   :  { %1072 = vmatpush.xpose.msk.msra.mxu3 %vm41_vm0, %v1260_v12  ;;  %1038 = vmatpush.xpose.msk.msra.mxu0 %vm41_vm0, %v1260_v12  ;;  %v45_v17 = vsel %vm41_vm0, %v26_v13, 0.0  ;;  %v51_v18 = vsel %vm41_vm0, %v28_v14, 0.0  ;;  %v57_v19 = vsel %vm41_vm0, %v30_v15, 0.0  ;;  %v1310_v23 = vld [vmem:[%s1635_s0 + $0x68] sm:$0xff]  ;;  %v32_v24 = vmul.f32 %v1289_v20, %v1289_v20  ;;  %v1325_v27 = vld [vmem:[%s1635_s0 + $0x60] sm:$0xff]  ;;  %v1338_v30 = vld [vmem:[%s1635_s0 + $0x50] sm:$0xff] }
   0x8   :  { %1070 = vmatpush.xpose.msk.msra.mxu1 %vm41_vm0, %v1260_v12  ;;  %v31_v25 = vmul.f32 %v1294_v21, %v1294_v21  ;;  %v33_v26 = vmul.f32 %v1303_v22, %v1303_v22  ;;  %v1344_v32 = vld [vmem:[%s1635_s0 + $0x48] sm:$0xff]  ;;  %v1351_v33 = vld [vmem:[%s1635_s0 + $0x58] sm:$0xff]  ;;  %v35_v34 = vmul.f32 %v1338_v30, %v1338_v30  ;;  %v38_v40 = vmul.f32 %v1310_v23, %v1310_v23 }
   0x9   :  { %v63_v28 = vsel %vm41_vm0, %v32_v24, 0.0  ;;  %v34_v35 = vmul.f32 %v1344_v32, %v1344_v32  ;;  %v36_v36 = vmul.f32 %v1351_v33, %v1351_v33  ;;  %v37_v41 = vmul.f32 %v1325_v27, %v1325_v27 }
   0xa   :  { %1074 = vmatpush.xpose.msk.msra.mxu2 %vm41_vm0, %v1275_v16  ;;  %v60_v29 = vsel %vm41_vm0, %v31_v25, 0.0  ;;  %v66_v31 = vsel %vm41_vm0, %v33_v26, 0.0  ;;  %v72_v37 = vsel %vm41_vm0, %v35_v34, 0.0  ;;  %v81_v43 = vsel %vm41_vm0, %v38_v40, 0.0 }
   0xb   :  { %1075 = vmatpush.xpose.msk.msra.mxu3 %vm41_vm0, %v1275_v16  ;;  %1039 = vmatpush.xpose.msk.msra.mxu0 %vm41_vm0, %v1275_v16  ;;  %v69_v38 = vsel %vm41_vm0, %v34_v35, 0.0  ;;  %v75_v39 = vsel %vm41_vm0, %v36_v36, 0.0  ;;  %v78_v44 = vsel %vm41_vm0, %v37_v41, 0.0  ;;  %v84_v45 = vsel %vm41_vm0, %v39_v42, 0.0 }
   0xc   :  { %1073 = vmatpush.xpose.msk.msra.mxu1 %vm41_vm0, %v1275_v16  ;;  %v87_v47 = vsel %vm41_vm0, %v40_v46, 0.0 }
   0xd   :  { %46 = vadd.xlane.f32.xlu0 %v45_v17  ;;  %52 = vadd.xlane.f32.xlu1 %v51_v18 }
   0xe   :  { %58 = vadd.xlane.f32.xlu2 %v57_v19  ;;  %1077 = vmatpush.xpose.msk.msra.mxu2 %vm41_vm0, %v1310_v23 }
   0xf   :  { %1078 = vmatpush.xpose.msk.msra.mxu3 %vm41_vm0, %v1310_v23  ;;  %1040 = vmatpush.xpose.msk.msra.mxu0 %vm41_vm0, %v1310_v23 }
  0x10   :  { %1076 = vmatpush.xpose.msk.msra.mxu1 %vm41_vm0, %v1310_v23 }
  0x12   :  { %1080 = vmatpush.xpose.msk.msra.mxu2 %vm41_vm0, %v1325_v27 }
  0x13   :  { %1081 = vmatpush.xpose.msk.msra.mxu3 %vm41_vm0, %v1325_v27  ;;  %1041 = vmatpush.xpose.msk.msra.mxu0 %vm41_vm0, %v1325_v27 }
  0x14   :  { %1079 = vmatpush.xpose.msk.msra.mxu1 %vm41_vm0, %v1325_v27 }
  0x15   :  { %64 = vadd.xlane.f32.xlu1 %v63_v28  ;;  %61 = vadd.xlane.f32.xlu0 %v60_v29 }
  0x16   :  { %67 = vadd.xlane.f32.xlu2 %v66_v31  ;;  %1083 = vmatpush.xpose.msk.msra.mxu2 %vm41_vm0, %v1351_v33 }
  0x17   :  { %1084 = vmatpush.xpose.msk.msra.mxu3 %vm41_vm0, %v1351_v33  ;;  %1042 = vmatpush.xpose.msk.msra.mxu0 %vm41_vm0, %v1351_v33 }
  0x18   :  { %1082 = vmatpush.xpose.msk.msra.mxu1 %vm41_vm0, %v1351_v33 }
  0x1a   :  { %1086 = vmatpush.xpose.msk.msra.mxu2 %vm41_vm0, %v1338_v30 }
  0x1b   :  { %1087 = vmatpush.xpose.msk.msra.mxu3 %vm41_vm0, %v1338_v30  ;;  %1043 = vmatpush.xpose.msk.msra.mxu0 %vm41_vm0, %v1338_v30 }
  0x1c   :  { %1085 = vmatpush.xpose.msk.msra.mxu1 %vm41_vm0, %v1338_v30 }
  0x1d   :  { %73 = vadd.xlane.f32.xlu1 %v72_v37  ;;  %70 = vadd.xlane.f32.xlu0 %v69_v38 }
  0x1e   :  { %1089 = vmatpush.xpose.msk.msra.mxu2 %vm41_vm0, %v1344_v32  ;;  %76 = vadd.xlane.f32.xlu2 %v75_v39 }
  0x1f   :  { %1090 = vmatpush.xpose.msk.msra.mxu3 %vm41_vm0, %v1344_v32  ;;  %1044 = vmatpush.xpose.msk.msra.mxu0 %vm41_vm0, %v1344_v32 }
  0x20   :  { %1088 = vmatpush.xpose.msk.msra.mxu1 %vm41_vm0, %v1344_v32 }
  0x22   :  { %1092 = vmatpush.xpose.msk.msra.mxu2 %vm41_vm0, %v1303_v22 }
  0x23   :  { %1093 = vmatpush.xpose.msk.msra.mxu3 %vm41_vm0, %v1303_v22  ;;  %1045 = vmatpush.xpose.msk.msra.mxu0 %vm41_vm0, %v1303_v22 }
  0x24   :  { %1091 = vmatpush.xpose.msk.msra.mxu1 %vm41_vm0, %v1303_v22 }
  0x25   :  { %82 = vadd.xlane.f32.xlu1 %v81_v43  ;;  %79 = vadd.xlane.f32.xlu0 %v78_v44 }
  0x26   :  { %1095 = vmatpush.xpose.msk.msra.mxu2 %vm41_vm0, %v1289_v20  ;;  %85 = vadd.xlane.f32.xlu2 %v84_v45 }
  0x27   :  { %1096 = vmatpush.xpose.msk.msra.mxu3 %vm41_vm0, %v1289_v20  ;;  %1046 = vmatpush.xpose.msk.msra.mxu0 %vm41_vm0, %v1289_v20 }
  0x28   :  { %1094 = vmatpush.xpose.msk.msra.mxu1 %vm41_vm0, %v1289_v20 }
  0x2a   :  { %1098 = vmatpush.xpose.msk.msra.mxu2 %vm41_vm0, %v1294_v21 }
  0x2b   :  { %1099 = vmatpush.xpose.msk.msra.mxu3 %vm41_vm0, %v1294_v21  ;;  %1047 = vmatpush.xpose.msk.msra.mxu0 %vm41_vm0, %v1294_v21 }
  0x2c   :  { %1097 = vmatpush.xpose.msk.msra.mxu1 %vm41_vm0, %v1294_v21 }
  0x2d   :  { %88 = vadd.xlane.f32.xlu0 %v87_v47 }
  0x2e   :  { %1101 = vmatpush.xpose.msk.msra.mxu2 %vm41_vm0, %v1254_v10 }
  0x2f   :  { %1102 = vmatpush.xpose.msk.msra.mxu3 %vm41_vm0, %v1254_v10  ;;  %1048 = vmatpush.xpose.msk.msra.mxu0 %vm41_vm0, %v1254_v10 }
  0x30   :  { %1100 = vmatpush.xpose.msk.msra.mxu1 %vm41_vm0, %v1254_v10 }
  0x32   :  { %1104 = vmatpush.xpose.msk.msra.mxu2 %vm41_vm0, %v1235_v4 }
  0x33   :  { %1105 = vmatpush.xpose.msk.msra.mxu3 %vm41_vm0, %v1235_v4  ;;  %1049 = vmatpush.xpose.msk.msra.mxu0 %vm41_vm0, %v1235_v4 }
  0x34   :  { %1103 = vmatpush.xpose.msk.msra.mxu1 %vm41_vm0, %v1235_v4 }
  0x36   :  { %1107 = vmatpush.xpose.msk.msra.mxu2 %vm41_vm0, %v1245_v6 }
  0x37   :  { %1108 = vmatpush.xpose.msk.msra.mxu3 %vm41_vm0, %v1245_v6  ;;  %1050 = vmatpush.xpose.msk.msra.mxu0 %vm41_vm0, %v1245_v6 }
  0x38   :  { %1106 = vmatpush.xpose.msk.msra.mxu1 %vm41_vm0, %v1245_v6 }
  0x3a   :  { %1110 = vmatpush.xpose.msk.msra.mxu2 %vm41_vm0, %v1226_v1 }
  0x3b   :  { %1111 = vmatpush.xpose.msk.msra.mxu3 %vm41_vm0, %v1226_v1  ;;  %1051 = vmatpush.xpose.msk.msra.mxu0 %vm41_vm0, %v1226_v1 }
  0x3c   :  { %1109 = vmatpush.xpose.msk.msra.mxu1 %vm41_vm0, %v1226_v1 }
  0x3e   :  { %1113 = vmatpush.xpose.msk.msra.mxu2 %vm41_vm0, %v1240_v5 }
  0x3f   :  { %1114 = vmatpush.xpose.msk.msra.mxu3 %vm41_vm0, %v1240_v5  ;;  %1052 = vmatpush.xpose.msk.msra.mxu0 %vm41_vm0, %v1240_v5 }
  0x40   :  { %1112 = vmatpush.xpose.msk.msra.mxu1 %vm41_vm0, %v1240_v5 }
  0x42   :  { %1116 = vmatpush.xpose.msk.msra.mxu2 %vm41_vm0, %v1221_v0 }
  0x43   :  { %1117 = vmatpush.xpose.msk.msra.mxu3 %vm41_vm0, %v1221_v0  ;;  %1053 = vmatpush.xpose.msk.msra.mxu0 %vm41_vm0, %v1221_v0 }
  0x44   :  { %1115 = vmatpush.xpose.msk.msra.mxu1 %vm41_vm0, %v1221_v0 }
  0x45   :  { %1062 = vmatmul.msk.f32.vlgmr.msra.gmra.mxu2 %vm41_vm0, %v1303_v22 }
  0x46   :  { %1066 = vmatmul.msk.f32.vlgmr.msra.gmra.mxu3 %vm41_vm0, %v1325_v27  ;;  %1054 = vmatmul.msk.f32.vlgmr.msra.gmra.mxu0 %vm41_vm0, %v1221_v0 }
  0x47   :  { %1058 = vmatmul.msk.f32.vlgmr.msra.gmra.mxu1 %vm41_vm0, %v1235_v4 }
  0x4d   :  { %1063 = vmatmul.msk.f32.gmra.mxu2 %vm41_vm0, %v1344_v32 }
  0x4e   :  { %1067 = vmatmul.msk.f32.gmra.mxu3 %vm41_vm0, %v1310_v23  ;;  %1055 = vmatmul.msk.f32.gmra.mxu0 %vm41_vm0, %v1240_v5 }
  0x4f   :  { %1059 = vmatmul.msk.f32.gmra.mxu1 %vm41_vm0, %v1254_v10 }
  0x55   :  { %1064 = vmatmul.msk.f32.gmra.mxu2 %vm41_vm0, %v1338_v30  ;;  %v300_v30 = vlaneseq }
  0x56   :  { %1068 = vmatmul.msk.f32.gmra.mxu3 %vm41_vm0, %v1275_v16  ;;  %1056 = vmatmul.msk.f32.gmra.mxu0 %vm41_vm0, %v1226_v1 }
  0x57   :  { %1060 = vmatmul.msk.f32.gmra.mxu1 %vm41_vm0, %v1294_v21  ;;  %v1536_v46 = vand.u32 127, %v300_v30 }
  0x59   :  { %vm302_vm1 = vcmp.eq.s32.totalorder %v1536_v46, 0  ;;  %vm303_vm2 = vcmp.ge.s32.totalorder %v1536_v46, 16  ;;  %vm395_vm12 = vcmp.eq.s32.totalorder %v1536_v46, 1 }
  0x5a   :  { %vm1548_vm3 = vmor %vm302_vm1, %vm303_vm2 }
  0x5d   :  { %1065 = vmatmul.msk.f32.gmra.mxu2 %vm41_vm0, %v1351_v33 }
  0x5e   :  { %1069 = vmatmul.msk.f32.gmra.mxu3 %vm41_vm0, %v1260_v12  ;;  %1057 = vmatmul.msk.f32.gmra.mxu0 %vm41_vm0, %v1245_v6 }
  0x5f   :  { %1061 = vmatmul.msk.f32.gmra.mxu1 %vm41_vm0, %v1289_v20 }
  0x78   :  { %v44_v48 = vpop.xlane.xlu0 %43  ;;  %v1506_v50 = vpop.xlane.xlu1 %49 }
  0x79   :  { %203 = vxpose.xlu1.b32.start [1/16] (narrow) %v44_v48, 8  ;;  %v56_v52 = vpop.xlane.xlu2 %55 }
  0x80   :  { %v47_v49 = vpop.xlane.xlu0 %46  ;;  %v53_v51 = vpop.xlane.xlu1 %52 }
  0x81   :  { %204 = vxpose.xlu1.b32.cont [2/16] (narrow) %v47_v49, 8  ;;  %v1509_v53 = vpop.xlane.xlu2 %58 }
  0x88   :  { %v1512_v54 = vpop.xlane.xlu0 %61  ;;  %v65_v55 = vpop.xlane.xlu1 %64 }
  0x89   :  { %205 = vxpose.xlu1.b32.cont [3/16] (narrow) %v1506_v50, 8  ;;  %v1515_v56 = vpop.xlane.xlu2 %67 }
  0x90   :  { %v1518_v57 = vpop.xlane.xlu0 %70  ;;  %v1521_v58 = vpop.xlane.xlu1 %73 }
  0x91   :  { %206 = vxpose.xlu1.b32.cont [4/16] (narrow) %v53_v51, 8  ;;  %v77_v59 = vpop.xlane.xlu2 %76 }
  0x98   :  { %v1524_v60 = vpop.xlane.xlu0 %79  ;;  %v1527_v61 = vpop.xlane.xlu1 %82 }
  0x99   :  { %207 = vxpose.xlu1.b32.cont [5/16] (narrow) %v56_v52, 8  ;;  %v1530_v62 = vpop.xlane.xlu2 %85 }
  0xa0   :  { %v89_v63 = vpop.xlane.xlu0 %88 }
  0xa1   :  { %208 = vxpose.xlu1.b32.cont [6/16] (narrow) %v1509_v53, 8 }
  0xa9   :  { %209 = vxpose.xlu1.b32.cont [7/16] (narrow) %v1512_v54, 8 }
  0xb1   :  { %210 = vxpose.xlu1.b32.cont [8/16] (narrow) %v65_v55, 8 }
  0xb9   :  { %211 = vxpose.xlu1.b32.cont [9/16] (narrow) %v1515_v56, 8 }
  0xc1   :  { %212 = vxpose.xlu1.b32.cont [10/16] (narrow) %v1518_v57, 8 }
  0xc3   :  { %v155_v0 = vpop.f32.mrf.mxu0 }
  0xc4   :  { %v167_v1 = vpop.f32.mrf.mxu1  ;;  %v252_v21 = vmul.f32 2.0, %v155_v0 }
  0xc5   :  { %v256_v36 = vmul.f32 2.0, %v167_v1 }
  0xc8   :  { %v179_v2 = vpop.f32.mrf.mxu2 }
  0xc9   :  { %213 = vxpose.xlu1.b32.cont [11/16] (narrow) %v1521_v58, 8  ;;  %v191_v3 = vpop.f32.mrf.mxu3  ;;  %v260_v45 = vmul.f32 2.0, %v179_v2 }
  0xcb   :  { %v158_v4 = vpop.f32.mrf.mxu0 }
  0xcc   :  { %v170_v5 = vpop.f32.mrf.mxu1  ;;  %v253_v22 = vmul.f32 2.0, %v158_v4 }
  0xcd   :  { %v257_v39 = vmul.f32 2.0, %v170_v5 }
  0xd0   :  { %v182_v6 = vpop.f32.mrf.mxu2 }
  0xd1   :  { %214 = vxpose.xlu1.b32.cont [12/16] (narrow) %v77_v59, 8  ;;  %v194_v7 = vpop.f32.mrf.mxu3 }
  0xd3   :  { %v161_v8 = vpop.f32.mrf.mxu0 }
  0xd4   :  { %v173_v9 = vpop.f32.mrf.mxu1  ;;  %v254_v28 = vmul.f32 2.0, %v161_v8 }
  0xd5   :  { %v258_v42 = vmul.f32 2.0, %v173_v9 }
  0xd8   :  { %v185_v10 = vpop.f32.mrf.mxu2 }
  0xd9   :  { %215 = vxpose.xlu1.b32.cont [13/16] (narrow) %v1524_v60, 8  ;;  %v197_v11 = vpop.f32.mrf.mxu3 }
  0xdb   :  { %v164_v12 = vpop.f32.mrf.mxu0 }
  0xdc   :  { %v176_v13 = vpop.f32.mrf.mxu1  ;;  %v255_v18 = vmul.f32 2.0, %v164_v12 }
  0xdd   :  { %v259_v19 = vmul.f32 2.0, %v176_v13 }
  0xe0   :  { %v188_v14 = vpop.f32.mrf.mxu2 }
  0xe1   :  { %216 = vxpose.xlu1.b32.cont [14/16] (narrow) %v1527_v61, 8  ;;  %v200_v15 = vpop.f32.mrf.mxu3  ;;  %v263_v20 = vmul.f32 2.0, %v188_v14 }
  0xe2   :  { %v267_v23 = vmul.f32 2.0, %v200_v15 }
  0xe9   :  { %217 = vxpose.xlu1.b32.cont [15/16] (narrow) %v1530_v62, 8 }
  0xf1   :  { %218 = vxpose.xlu1.b32.end [16/16] (narrow) %v89_v63, 8 }
 0x11d   :  { %v219_v16 = vpop.trf.xlu1 }
 0x11e   :  { %v235_v17 = vperm.slane %v219_v16, 0 }
 0x120   :  { %v239_v24 = vadd.f32 %v235_v17, %v53_v51  ;;  %v243_v25 = vadd.f32 %v235_v17, %v65_v55  ;;  %v247_v26 = vadd.f32 %v235_v17, %v77_v59  ;;  %v251_v27 = vadd.f32 %v235_v17, %v89_v63 }
 0x121   :  { %v236_v29 = vadd.f32 %v235_v17, %v44_v48  ;;  %v237_v31 = vadd.f32 %v235_v17, %v47_v49  ;;  %v238_v35 = vadd.f32 %v235_v17, %v1506_v50  ;;  %v240_v38 = vadd.f32 %v235_v17, %v56_v52 }
 0x122   :  { %v271_v32 = vsub.f32 %v239_v24, %v255_v18  ;;  %v275_v33 = vsub.f32 %v243_v25, %v259_v19  ;;  %v279_v34 = vsub.f32 %v247_v26, %v263_v20  ;;  %v283_v37 = vsub.f32 %v251_v27, %v267_v23 }
 0x123   :  { %v268_v40 = vsub.f32 %v236_v29, %v252_v21  ;;  %v241_v41 = vadd.f32 %v235_v17, %v1509_v53  ;;  %v242_v43 = vadd.f32 %v235_v17, %v1512_v54  ;;  %v269_v44 = vsub.f32 %v237_v31, %v253_v22 }
 0x124   :  { %287 = vst [vmem:[#allocation2 + $0x18] sm:$0xff] %v271_v32  ;;  %v244_v47 = vadd.f32 %v235_v17, %v1515_v56  ;;  %v270_v48 = vsub.f32 %v238_v35, %v254_v28  ;;  %v261_v49 = vmul.f32 2.0, %v182_v6  ;;  %v245_v50 = vadd.f32 %v235_v17, %v1518_v57 }
 0x125   :  { %291 = vst [vmem:[#allocation2 + $0x38] sm:$0xff] %v275_v33  ;;  %v272_v51 = vsub.f32 %v240_v38, %v256_v36  ;;  %v262_v52 = vmul.f32 2.0, %v185_v10  ;;  %v246_v53 = vadd.f32 %v235_v17, %v1521_v58  ;;  %v273_v55 = vsub.f32 %v241_v41, %v257_v39 }
 0x126   :  { %295 = vst [vmem:[#allocation2 + $0x58] sm:$0xff] %v279_v34  ;;  %v264_v59 = vmul.f32 2.0, %v191_v3  ;;  %v265_v54 = vmul.f32 2.0, %v194_v7  ;;  %v248_v63 = vadd.f32 %v235_v17, %v1524_v60  ;;  %v274_v0 = vsub.f32 %v242_v43, %v258_v42 }
 0x127   :  { %299 = vst [vmem:[#allocation2 + $0x78] sm:$0xff] %v283_v37  ;;  %v249_v56 = vadd.f32 %v235_v17, %v1527_v61  ;;  %v276_v1 = vsub.f32 %v244_v47, %v260_v45  ;;  %v266_v57 = vmul.f32 2.0, %v197_v11  ;;  %v250_v2 = vadd.f32 %v235_v17, %v1530_v62 }
 0x128   :  { %284 = vst [vmem:[#allocation2] sm:$0xff] %v268_v40  ;;  %v277_v4 = vsub.f32 %v245_v50, %v261_v49  ;;  %v278_v58 = vsub.f32 %v246_v53, %v262_v52  ;;  %v280_v3 = vsub.f32 %v248_v63, %v264_v59  ;;  %v1206_v35 = vmov 0  }
 0x129   :  { %285 = vst [vmem:[#allocation2 + $0x8] sm:$0xff] %v269_v44  ;;  %v281_v5 = vsub.f32 %v249_v56, %v265_v54  ;;  %v282_v6 = vsub.f32 %v250_v2, %v266_v57  ;;  %v305_v36 = vsel %vm1548_vm3, 1, %v1206_v35 }
 0x12a   :  { %286 = vst [vmem:[#allocation2 + $0x10] sm:$0xff] %v270_v48 }
 0x12b   :  { %288 = vst [vmem:[#allocation2 + $0x20] sm:$0xff] %v272_v51 }
 0x12c   :  { %289 = vst [vmem:[#allocation2 + $0x28] sm:$0xff] %v273_v55 }
 0x12d   :  { %290 = vst [vmem:[#allocation2 + $0x30] sm:$0xff] %v274_v0 }
 0x12e   :  { %292 = vst [vmem:[#allocation2 + $0x40] sm:$0xff] %v276_v1 }
 0x12f   :  { %v306_v61 = vld [vmem:[#allocation2] sm:$0x1]  ;;  %293 = vst [vmem:[#allocation2 + $0x48] sm:$0xff] %v277_v4 }
 0x130   :  { %v308_v62 = vsel %vm1548_vm3, 1e+30, %v306_v61  ;;  %294 = vst [vmem:[#allocation2 + $0x50] sm:$0xff] %v278_v58 }
 0x131   :  { %v310_v7 = vsel %vm309_vm4, %v308_v62, inf  ;;  %296 = vst [vmem:[#allocation2 + $0x60] sm:$0xff] %v280_v3 }
 0x132   :  { %311 = vmin.xlane.f32.xlu2 %v310_v7  ;;  %297 = vst [vmem:[#allocation2 + $0x68] sm:$0xff] %v281_v5 }
 0x133   :  { %298 = vst [vmem:[#allocation2 + $0x70] sm:$0xff] %v282_v6 }
 0x1a5   :  { %v312_v8 = vpop.xlane.xlu2 %311 }
 0x1a6   :  { %v313_v9 = vrot.slane %v312_v8, 4 }
 0x1a8   :  { %v314_v10 = vmin.f32 %v312_v8, %v313_v9 }
 0x1aa   :  { %v315_v11 = vrot.slane %v314_v10, 2 }
 0x1ac   :  { %v316_v12 = vmin.f32 %v314_v10, %v315_v11 }
 0x1ae   :  { %v317_v13 = vrot.slane %v316_v12, 1 }
 0x1b0   :  { %v318_v14 = vmin.f32 %v316_v12, %v317_v13 }
 0x1b2   :  { %1118 = vpush %v318_v14 }
 0x1e3   :  { %s1555_s0 = spop %1118 }
 0x1e4   :  { %v320_v15 = vstv %s1555_s0 }
 0x1e5   :  { %vm321_vm5 = vcmp.eq.f32.partialorder %v308_v62, %v320_v15  ;;  %v348_v51 = vsel %vm302_vm1, %v320_v15, 0.0 }
 0x1e6   :  { %v322_v16 = vsel %vm321_vm5, %v1536_v46, 128  ;;  %vm443_vm5 = vcmp.eq.s32.totalorder %v1536_v46, 2 }
 0x1e7   :  { %v323_v17 = vsel %vm309_vm4, %v322_v16, 2147483647 }
 0x1e8   :  { %v325_v18 = vshra.s32 %v323_v17, 16  ;;  %v324_v20 = vand.u32 65535, %v323_v17 }
 0x1ea   :  { %v327_v19 = vcvt.s32.f32 %v325_v18  ;;  %v326_v22 = vcvt.s32.f32 %v324_v20 }
 0x1ec   :  { %328 = vmin.xlane.f32.xlu0 %v327_v19 }
 0x25f   :  { %v329_v21 = vpop.xlane.xlu0 %328 }
 0x260   :  { %vm330_vm6 = vcmp.eq.f32.partialorder %v327_v19, %v329_v21  ;;  %v335_v24 = vcvt.f32.s32 %v329_v21 }
 0x261   :  { %v331_v23 = vsel %vm330_vm6, %v326_v22, inf }
 0x262   :  { %332 = vmin.xlane.f32.xlu2 %v331_v23  ;;  %v336_v26 = vshll.u32 %v335_v24, 16 }
 0x2d5   :  { %v333_v25 = vpop.xlane.xlu2 %332 }
 0x2d6   :  { %v334_v27 = vcvt.f32.s32 %v333_v25 }
 0x2d8   :  { %v337_v28 = vadd.s32 %v336_v26, %v334_v27 }
 0x2da   :  { %v338_v29 = vrot.slane %v337_v28, 4 }
 0x2dc   :  { %vm339_vm7 = vcmp.lt.s32.totalorder %v337_v28, %v338_v29 }
 0x2dd   :  { %v340_v30 = vsel %vm339_vm7, %v337_v28, %v338_v29 }
 0x2de   :  { %v341_v31 = vrot.slane %v340_v30, 2 }
 0x2e0   :  { %vm342_vm8 = vcmp.lt.s32.totalorder %v340_v30, %v341_v31 }
 0x2e1   :  { %v343_v32 = vsel %vm342_vm8, %v340_v30, %v341_v31 }
 0x2e2   :  { %v344_v33 = vrot.slane %v343_v32, 1 }
 0x2e4   :  { %vm345_vm9 = vcmp.lt.s32.totalorder %v343_v32, %v344_v33 }
 0x2e5   :  { %v346_v34 = vsel %vm345_vm9, %v343_v32, %v344_v33 }
 0x2e6   :  { %1120 = vpush %v346_v34 }
 0x317   :  { %s1121_s9 = spop %1120 }
 0x318   :  { %v349_v37 = vstv %s1121_s9  ;;  %s352_s10 = scalar_lea.vmem [#allocation2], %s1121_s9 }
 0x319   :  { %vm350_vm10 = vcmp.eq.s32.totalorder %v1536_v46, %v349_v37  ;;  %v353_v38 = vld [vmem:[%s352_s10] sm:$0x1] }
 0x31a   :  { %v351_v39 = vsel %vm350_vm10, 1, %v305_v36  ;;  %v354_v40 = vmin.f32 %v306_v61, %v353_v38 }
 0x31b   :  { %vm355_vm11 = vcmp.gt.s32.totalorder %v351_v39, 0 }
 0x31c   :  { %v356_v41 = vsel %vm355_vm11, 1e+30, %v354_v40 }
 0x31d   :  { %v357_v42 = vsel %vm309_vm4, %v356_v41, inf }
 0x31e   :  { %358 = vmin.xlane.f32.xlu0 %v357_v42 }
 0x391   :  { %v359_v43 = vpop.xlane.xlu0 %358 }
 0x392   :  { %v360_v44 = vrot.slane %v359_v43, 4 }
 0x394   :  { %v361_v45 = vmin.f32 %v359_v43, %v360_v44 }
 0x396   :  { %v362_v47 = vrot.slane %v361_v45, 2 }
 0x398   :  { %v363_v48 = vmin.f32 %v361_v45, %v362_v47 }
 0x39a   :  { %v364_v49 = vrot.slane %v363_v48, 1 }
 0x39c   :  { %v365_v50 = vmin.f32 %v363_v48, %v364_v49 }
 0x39e   :  { %1122 = vpush %v365_v50 }
 0x3cf   :  { %s1123_s11 = spop %1122 }
 0x3d0   :  { %v367_v52 = vstv %s1123_s11 }
 0x3d1   :  { %vm368_vm13 = vcmp.eq.f32.partialorder %v356_v41, %v367_v52  ;;  %v396_v53 = vsel %vm395_vm12, %v367_v52, %v348_v51 }
 0x3d2   :  { %v369_v55 = vsel %vm368_vm13, %v1536_v46, 128  ;;  %vm491_vm13 = vcmp.eq.s32.totalorder %v1536_v46, 3 }
 0x3d3   :  { %v370_v59 = vsel %vm309_vm4, %v369_v55, 2147483647 }
 0x3d4   :  { %v372_v54 = vshra.s32 %v370_v59, 16  ;;  %v371_v0 = vand.u32 65535, %v370_v59 }
 0x3d6   :  { %v374_v63 = vcvt.s32.f32 %v372_v54  ;;  %v373_v1 = vcvt.s32.f32 %v371_v0 }
 0x3d8   :  { %375 = vmin.xlane.f32.xlu2 %v374_v63 }
 0x44b   :  { %v376_v56 = vpop.xlane.xlu2 %375 }
 0x44c   :  { %vm377_vm14 = vcmp.eq.f32.partialorder %v374_v63, %v376_v56  ;;  %v382_v2 = vcvt.f32.s32 %v376_v56 }
 0x44d   :  { %v378_v57 = vsel %vm377_vm14, %v373_v1, inf }
 0x44e   :  { %379 = vmin.xlane.f32.xlu0 %v378_v57  ;;  %v383_v58 = vshll.u32 %v382_v2, 16 }
 0x4c1   :  { %v380_v4 = vpop.xlane.xlu0 %379 }
 0x4c2   :  { %v381_v60 = vcvt.f32.s32 %v380_v4 }
 0x4c4   :  { %v384_v3 = vadd.s32 %v383_v58, %v381_v60 }
 0x4c6   :  { %v385_v5 = vrot.slane %v384_v3, 4 }
 0x4c8   :  { %vm386_vm15 = vcmp.lt.s32.totalorder %v384_v3, %v385_v5 }
 0x4c9   :  { %v387_v61 = vsel %vm386_vm15, %v384_v3, %v385_v5 }
 0x4ca   :  { %v388_v6 = vrot.slane %v387_v61, 2 }
 0x4cc   :  { %vm389_vm0 = vcmp.lt.s32.totalorder %v387_v61, %v388_v6 }
 0x4cd   :  { %v390_v62 = vsel %vm389_vm0, %v387_v61, %v388_v6 }
 0x4ce   :  { %v391_v7 = vrot.slane %v390_v62, 1 }
 0x4d0   :  { %vm392_vm1 = vcmp.lt.s32.totalorder %v390_v62, %v391_v7 }
 0x4d1   :  { %v393_v8 = vsel %vm392_vm1, %v390_v62, %v391_v7 }
 0x4d2   :  { %1124 = vpush %v393_v8 }
 0x503   :  { %s1125_s12 = spop %1124 }
 0x504   :  { %v397_v9 = vstv %s1125_s12  ;;  %s400_s13 = scalar_lea.vmem [#allocation2], %s1125_s12 }
 0x505   :  { %vm398_vm2 = vcmp.eq.s32.totalorder %v1536_v46, %v397_v9  ;;  %v401_v10 = vld [vmem:[%s400_s13] sm:$0x1] }
 0x506   :  { %v399_v11 = vsel %vm398_vm2, 1, %v351_v39  ;;  %v402_v12 = vmin.f32 %v354_v40, %v401_v10 }
 0x507   :  { %vm403_vm3 = vcmp.gt.s32.totalorder %v399_v11, 0 }
 0x508   :  { %v404_v13 = vsel %vm403_vm3, 1e+30, %v402_v12 }
 0x509   :  { %v405_v14 = vsel %vm309_vm4, %v404_v13, inf }
 0x50a   :  { %406 = vmin.xlane.f32.xlu2 %v405_v14 }
 0x57d   :  { %v407_v15 = vpop.xlane.xlu2 %406 }
 0x57e   :  { %v408_v16 = vrot.slane %v407_v15, 4 }
 0x580   :  { %v409_v17 = vmin.f32 %v407_v15, %v408_v16 }
 0x582   :  { %v410_v18 = vrot.slane %v409_v17, 2 }
 0x584   :  { %v411_v19 = vmin.f32 %v409_v17, %v410_v18 }
 0x586   :  { %v412_v20 = vrot.slane %v411_v19, 1 }
 0x588   :  { %v413_v21 = vmin.f32 %v411_v19, %v412_v20 }
 0x58a   :  { %1126 = vpush %v413_v21 }
 0x5bb   :  { %s1127_s14 = spop %1126 }
 0x5bc   :  { %v415_v22 = vstv %s1127_s14 }
 0x5bd   :  { %vm416_vm6 = vcmp.eq.f32.partialorder %v404_v13, %v415_v22  ;;  %v444_v23 = vsel %vm443_vm5, %v415_v22, %v396_v53 }
 0x5be   :  { %v417_v24 = vsel %vm416_vm6, %v1536_v46, 128  ;;  %vm539_vm6 = vcmp.eq.s32.totalorder %v1536_v46, 4 }
 0x5bf   :  { %v418_v25 = vsel %vm309_vm4, %v417_v24, 2147483647 }
 0x5c0   :  { %v420_v26 = vshra.s32 %v418_v25, 16  ;;  %v419_v28 = vand.u32 65535, %v418_v25 }
 0x5c2   :  { %v422_v27 = vcvt.s32.f32 %v420_v26  ;;  %v421_v30 = vcvt.s32.f32 %v419_v28 }
 0x5c4   :  { %423 = vmin.xlane.f32.xlu0 %v422_v27 }
 0x637   :  { %v424_v29 = vpop.xlane.xlu0 %423 }
 0x638   :  { %vm425_vm7 = vcmp.eq.f32.partialorder %v422_v27, %v424_v29  ;;  %v430_v32 = vcvt.f32.s32 %v424_v29 }
 0x639   :  { %v426_v31 = vsel %vm425_vm7, %v421_v30, inf }
 0x63a   :  { %427 = vmin.xlane.f32.xlu2 %v426_v31  ;;  %v431_v34 = vshll.u32 %v430_v32, 16 }
 0x6ad   :  { %v428_v33 = vpop.xlane.xlu2 %427 }
 0x6ae   :  { %v429_v35 = vcvt.f32.s32 %v428_v33 }
 0x6b0   :  { %v432_v36 = vadd.s32 %v431_v34, %v429_v35 }
 0x6b2   :  { %v433_v37 = vrot.slane %v432_v36, 4 }
 0x6b4   :  { %vm434_vm8 = vcmp.lt.s32.totalorder %v432_v36, %v433_v37 }
 0x6b5   :  { %v435_v38 = vsel %vm434_vm8, %v432_v36, %v433_v37 }
 0x6b6   :  { %v436_v39 = vrot.slane %v435_v38, 2 }
 0x6b8   :  { %vm437_vm9 = vcmp.lt.s32.totalorder %v435_v38, %v436_v39 }
 0x6b9   :  { %v438_v40 = vsel %vm437_vm9, %v435_v38, %v436_v39 }
 0x6ba   :  { %v439_v41 = vrot.slane %v438_v40, 1 }
 0x6bc   :  { %vm440_vm10 = vcmp.lt.s32.totalorder %v438_v40, %v439_v41 }
 0x6bd   :  { %v441_v42 = vsel %vm440_vm10, %v438_v40, %v439_v41 }
 0x6be   :  { %1128 = vpush %v441_v42 }
 0x6ef   :  { %s1129_s15 = spop %1128 }
 0x6f0   :  { %v445_v43 = vstv %s1129_s15  ;;  %s448_s16 = scalar_lea.vmem [#allocation2], %s1129_s15 }
 0x6f1   :  { %vm446_vm11 = vcmp.eq.s32.totalorder %v1536_v46, %v445_v43  ;;  %v449_v44 = vld [vmem:[%s448_s16] sm:$0x1] }
 0x6f2   :  { %v447_v45 = vsel %vm446_vm11, 1, %v399_v11  ;;  %v450_v47 = vmin.f32 %v402_v12, %v449_v44 }
 0x6f3   :  { %vm451_vm12 = vcmp.gt.s32.totalorder %v447_v45, 0 }
 0x6f4   :  { %v452_v48 = vsel %vm451_vm12, 1e+30, %v450_v47 }
 0x6f5   :  { %v453_v49 = vsel %vm309_vm4, %v452_v48, inf }
 0x6f6   :  { %454 = vmin.xlane.f32.xlu0 %v453_v49 }
 0x769   :  { %v455_v50 = vpop.xlane.xlu0 %454 }
 0x76a   :  { %v456_v51 = vrot.slane %v455_v50, 4 }
 0x76c   :  { %v457_v52 = vmin.f32 %v455_v50, %v456_v51 }
 0x76e   :  { %v458_v53 = vrot.slane %v457_v52, 2 }
 0x770   :  { %v459_v55 = vmin.f32 %v457_v52, %v458_v53 }
 0x772   :  { %v460_v59 = vrot.slane %v459_v55, 1 }
 0x774   :  { %v461_v54 = vmin.f32 %v459_v55, %v460_v59 }
 0x776   :  { %1130 = vpush %v461_v54 }
 0x7a7   :  { %s1131_s17 = spop %1130 }
 0x7a8   :  { %v463_v63 = vstv %s1131_s17 }
 0x7a9   :  { %vm464_vm14 = vcmp.eq.f32.partialorder %v452_v48, %v463_v63  ;;  %v492_v0 = vsel %vm491_vm13, %v463_v63, %v444_v23 }
 0x7aa   :  { %v465_v56 = vsel %vm464_vm14, %v1536_v46, 128  ;;  %vm587_vm14 = vcmp.eq.s32.totalorder %v1536_v46, 5 }
 0x7ab   :  { %v466_v1 = vsel %vm309_vm4, %v465_v56, 2147483647 }
 0x7ac   :  { %v468_v57 = vshra.s32 %v466_v1, 16  ;;  %v467_v4 = vand.u32 65535, %v466_v1 }
 0x7ae   :  { %v470_v2 = vcvt.s32.f32 %v468_v57  ;;  %v469_v60 = vcvt.s32.f32 %v467_v4 }
 0x7b0   :  { %471 = vmin.xlane.f32.xlu2 %v470_v2 }
 0x823   :  { %v472_v58 = vpop.xlane.xlu2 %471 }
 0x824   :  { %vm473_vm15 = vcmp.eq.f32.partialorder %v470_v2, %v472_v58  ;;  %v478_v5 = vcvt.f32.s32 %v472_v58 }
 0x825   :  { %v474_v3 = vsel %vm473_vm15, %v469_v60, inf }
 0x826   :  { %475 = vmin.xlane.f32.xlu0 %v474_v3  ;;  %v479_v6 = vshll.u32 %v478_v5, 16 }
 0x899   :  { %v476_v61 = vpop.xlane.xlu0 %475 }
 0x89a   :  { %v477_v62 = vcvt.f32.s32 %v476_v61 }
 0x89c   :  { %v480_v7 = vadd.s32 %v479_v6, %v477_v62 }
 0x89e   :  { %v481_v8 = vrot.slane %v480_v7, 4 }
 0x8a0   :  { %vm482_vm0 = vcmp.lt.s32.totalorder %v480_v7, %v481_v8 }
 0x8a1   :  { %v483_v9 = vsel %vm482_vm0, %v480_v7, %v481_v8 }
 0x8a2   :  { %v484_v10 = vrot.slane %v483_v9, 2 }
 0x8a4   :  { %vm485_vm1 = vcmp.lt.s32.totalorder %v483_v9, %v484_v10 }
 0x8a5   :  { %v486_v11 = vsel %vm485_vm1, %v483_v9, %v484_v10 }
 0x8a6   :  { %v487_v12 = vrot.slane %v486_v11, 1 }
 0x8a8   :  { %vm488_vm2 = vcmp.lt.s32.totalorder %v486_v11, %v487_v12 }
 0x8a9   :  { %v489_v13 = vsel %vm488_vm2, %v486_v11, %v487_v12 }
 0x8aa   :  { %1132 = vpush %v489_v13 }
 0x8db   :  { %s1133_s18 = spop %1132 }
 0x8dc   :  { %v493_v14 = vstv %s1133_s18  ;;  %s496_s19 = scalar_lea.vmem [#allocation2], %s1133_s18 }
 0x8dd   :  { %vm494_vm3 = vcmp.eq.s32.totalorder %v1536_v46, %v493_v14  ;;  %v497_v15 = vld [vmem:[%s496_s19] sm:$0x1] }
 0x8de   :  { %v495_v16 = vsel %vm494_vm3, 1, %v447_v45  ;;  %v498_v17 = vmin.f32 %v450_v47, %v497_v15 }
 0x8df   :  { %vm499_vm5 = vcmp.gt.s32.totalorder %v495_v16, 0 }
 0x8e0   :  { %v500_v18 = vsel %vm499_vm5, 1e+30, %v498_v17 }
 0x8e1   :  { %v501_v19 = vsel %vm309_vm4, %v500_v18, inf }
 0x8e2   :  { %502 = vmin.xlane.f32.xlu2 %v501_v19 }
 0x955   :  { %v503_v20 = vpop.xlane.xlu2 %502 }
 0x956   :  { %v504_v21 = vrot.slane %v503_v20, 4 }
 0x958   :  { %v505_v22 = vmin.f32 %v503_v20, %v504_v21 }
 0x95a   :  { %v506_v23 = vrot.slane %v505_v22, 2 }
 0x95c   :  { %v507_v24 = vmin.f32 %v505_v22, %v506_v23 }
 0x95e   :  { %v508_v25 = vrot.slane %v507_v24, 1 }
 0x960   :  { %v509_v26 = vmin.f32 %v507_v24, %v508_v25 }
 0x962   :  { %1134 = vpush %v509_v26 }
 0x993   :  { %s1135_s20 = spop %1134 }
 0x994   :  { %v511_v27 = vstv %s1135_s20 }
 0x995   :  { %vm512_vm7 = vcmp.eq.f32.partialorder %v500_v18, %v511_v27  ;;  %v540_v28 = vsel %vm539_vm6, %v511_v27, %v492_v0 }
 0x996   :  { %v513_v29 = vsel %vm512_vm7, %v1536_v46, 128  ;;  %vm635_vm7 = vcmp.eq.s32.totalorder %v1536_v46, 6 }
 0x997   :  { %v514_v30 = vsel %vm309_vm4, %v513_v29, 2147483647 }
 0x998   :  { %v516_v31 = vshra.s32 %v514_v30, 16  ;;  %v515_v33 = vand.u32 65535, %v514_v30 }
 0x99a   :  { %v518_v32 = vcvt.s32.f32 %v516_v31  ;;  %v517_v35 = vcvt.s32.f32 %v515_v33 }
 0x99c   :  { %519 = vmin.xlane.f32.xlu0 %v518_v32 }
 0xa0f   :  { %v520_v34 = vpop.xlane.xlu0 %519 }
 0xa10   :  { %vm521_vm8 = vcmp.eq.f32.partialorder %v518_v32, %v520_v34  ;;  %v526_v37 = vcvt.f32.s32 %v520_v34 }
 0xa11   :  { %v522_v36 = vsel %vm521_vm8, %v517_v35, inf }
 0xa12   :  { %523 = vmin.xlane.f32.xlu2 %v522_v36  ;;  %v527_v39 = vshll.u32 %v526_v37, 16 }
 0xa85   :  { %v524_v38 = vpop.xlane.xlu2 %523 }
 0xa86   :  { %v525_v40 = vcvt.f32.s32 %v524_v38 }
 0xa88   :  { %v528_v41 = vadd.s32 %v527_v39, %v525_v40 }
 0xa8a   :  { %v529_v42 = vrot.slane %v528_v41, 4 }
 0xa8c   :  { %vm530_vm9 = vcmp.lt.s32.totalorder %v528_v41, %v529_v42 }
 0xa8d   :  { %v531_v43 = vsel %vm530_vm9, %v528_v41, %v529_v42 }
 0xa8e   :  { %v532_v44 = vrot.slane %v531_v43, 2 }
 0xa90   :  { %vm533_vm10 = vcmp.lt.s32.totalorder %v531_v43, %v532_v44 }
 0xa91   :  { %v534_v45 = vsel %vm533_vm10, %v531_v43, %v532_v44 }
 0xa92   :  { %v535_v47 = vrot.slane %v534_v45, 1 }
 0xa94   :  { %vm536_vm11 = vcmp.lt.s32.totalorder %v534_v45, %v535_v47 }
 0xa95   :  { %v537_v48 = vsel %vm536_vm11, %v534_v45, %v535_v47 }
 0xa96   :  { %1136 = vpush %v537_v48 }
 0xac7   :  { %s1137_s21 = spop %1136 }
 0xac8   :  { %v541_v49 = vstv %s1137_s21  ;;  %s544_s22 = scalar_lea.vmem [#allocation2], %s1137_s21  ;;  %s1207_s21 = smov [#allocation3]  }
 0xac9   :  { %vm542_vm12 = vcmp.eq.s32.totalorder %v1536_v46, %v541_v49  ;;  %v545_v50 = vld [vmem:[%s544_s22] sm:$0x1]  ;;  %s1013_s22 = sshll.u32 %s1207_s21, 4  ;;  %s1014_s22 = int_to_ptr.vmem [resolvable:$true] %s1013_s22 }
 0xaca   :  { %v543_v51 = vsel %vm542_vm12, 1, %v495_v16  ;;  %v546_v52 = vmin.f32 %v498_v17, %v545_v50 }
 0xacb   :  { %vm547_vm13 = vcmp.gt.s32.totalorder %v543_v51, 0 }
 0xacc   :  { %v548_v53 = vsel %vm547_vm13, 1e+30, %v546_v52 }
 0xacd   :  { %v549_v55 = vsel %vm309_vm4, %v548_v53, inf }
 0xace   :  { %550 = vmin.xlane.f32.xlu0 %v549_v55 }
 0xb41   :  { %v551_v59 = vpop.xlane.xlu0 %550 }
 0xb42   :  { %v552_v54 = vrot.slane %v551_v59, 4 }
 0xb44   :  { %v553_v63 = vmin.f32 %v551_v59, %v552_v54 }
 0xb46   :  { %v554_v0 = vrot.slane %v553_v63, 2 }
 0xb48   :  { %v555_v56 = vmin.f32 %v553_v63, %v554_v0 }
 0xb4a   :  { %v556_v1 = vrot.slane %v555_v56, 1 }
 0xb4c   :  { %v557_v57 = vmin.f32 %v555_v56, %v556_v1 }
 0xb4e   :  { %1138 = vpush %v557_v57 }
 0xb7f   :  { %s1139_s23 = spop %1138 }
 0xb80   :  { %v559_v2 = vstv %s1139_s23 }
 0xb81   :  { %vm560_vm15 = vcmp.eq.f32.partialorder %v548_v53, %v559_v2  ;;  %v588_v4 = vsel %vm587_vm14, %v559_v2, %v540_v28 }
 0xb82   :  { %v561_v58 = vsel %vm560_vm15, %v1536_v46, 128  ;;  %vm683_vm15 = vcmp.eq.s32.totalorder %v1536_v46, 7 }
 0xb83   :  { %v562_v60 = vsel %vm309_vm4, %v561_v58, 2147483647 }
 0xb84   :  { %v564_v3 = vshra.s32 %v562_v60, 16  ;;  %v563_v61 = vand.u32 65535, %v562_v60 }
 0xb86   :  { %v566_v5 = vcvt.s32.f32 %v564_v3  ;;  %v565_v62 = vcvt.s32.f32 %v563_v61 }
 0xb88   :  { %567 = vmin.xlane.f32.xlu2 %v566_v5 }
 0xbfb   :  { %v568_v6 = vpop.xlane.xlu2 %567 }
 0xbfc   :  { %vm569_vm0 = vcmp.eq.f32.partialorder %v566_v5, %v568_v6  ;;  %v574_v8 = vcvt.f32.s32 %v568_v6 }
 0xbfd   :  { %v570_v7 = vsel %vm569_vm0, %v565_v62, inf }
 0xbfe   :  { %571 = vmin.xlane.f32.xlu0 %v570_v7  ;;  %v575_v10 = vshll.u32 %v574_v8, 16 }
 0xc71   :  { %v572_v9 = vpop.xlane.xlu0 %571 }
 0xc72   :  { %v573_v11 = vcvt.f32.s32 %v572_v9 }
 0xc74   :  { %v576_v12 = vadd.s32 %v575_v10, %v573_v11 }
 0xc76   :  { %v577_v13 = vrot.slane %v576_v12, 4 }
 0xc78   :  { %vm578_vm1 = vcmp.lt.s32.totalorder %v576_v12, %v577_v13 }
 0xc79   :  { %v579_v14 = vsel %vm578_vm1, %v576_v12, %v577_v13 }
 0xc7a   :  { %v580_v15 = vrot.slane %v579_v14, 2 }
 0xc7c   :  { %vm581_vm2 = vcmp.lt.s32.totalorder %v579_v14, %v580_v15 }
 0xc7d   :  { %v582_v16 = vsel %vm581_vm2, %v579_v14, %v580_v15 }
 0xc7e   :  { %v583_v17 = vrot.slane %v582_v16, 1 }
 0xc80   :  { %vm584_vm3 = vcmp.lt.s32.totalorder %v582_v16, %v583_v17 }
 0xc81   :  { %v585_v18 = vsel %vm584_vm3, %v582_v16, %v583_v17 }
 0xc82   :  { %1140 = vpush %v585_v18 }
 0xcb3   :  { %s1141_s24 = spop %1140 }
 0xcb4   :  { %v589_v19 = vstv %s1141_s24  ;;  %s592_s25 = scalar_lea.vmem [#allocation2], %s1141_s24 }
 0xcb5   :  { %vm590_vm5 = vcmp.eq.s32.totalorder %v1536_v46, %v589_v19  ;;  %v593_v20 = vld [vmem:[%s592_s25] sm:$0x1]  ;;  %s1015_s25 = sshll.u32 %s1636_s1, 4  ;;  %s1016_s25 = int_to_ptr.hbm [resolvable:$true] %s1015_s25 }
 0xcb6   :  { %v591_v21 = vsel %vm590_vm5, 1, %v543_v51  ;;  %v594_v22 = vmin.f32 %v546_v52, %v593_v20 }
 0xcb7   :  { %vm595_vm6 = vcmp.gt.s32.totalorder %v591_v21, 0 }
 0xcb8   :  { %v596_v23 = vsel %vm595_vm6, 1e+30, %v594_v22 }
 0xcb9   :  { %v597_v24 = vsel %vm309_vm4, %v596_v23, inf }
 0xcba   :  { %598 = vmin.xlane.f32.xlu2 %v597_v24 }
 0xd2d   :  { %v599_v25 = vpop.xlane.xlu2 %598 }
 0xd2e   :  { %v600_v26 = vrot.slane %v599_v25, 4 }
 0xd30   :  { %v601_v27 = vmin.f32 %v599_v25, %v600_v26 }
 0xd32   :  { %v602_v28 = vrot.slane %v601_v27, 2 }
 0xd34   :  { %v603_v29 = vmin.f32 %v601_v27, %v602_v28 }
 0xd36   :  { %v604_v30 = vrot.slane %v603_v29, 1 }
 0xd38   :  { %v605_v31 = vmin.f32 %v603_v29, %v604_v30 }
 0xd3a   :  { %1142 = vpush %v605_v31 }
 0xd6b   :  { %s1143_s26 = spop %1142 }
 0xd6c   :  { %v607_v32 = vstv %s1143_s26 }
 0xd6d   :  { %vm608_vm8 = vcmp.eq.f32.partialorder %v596_v23, %v607_v32  ;;  %v636_v33 = vsel %vm635_vm7, %v607_v32, %v588_v4 }
 0xd6e   :  { %v609_v34 = vsel %vm608_vm8, %v1536_v46, 128  ;;  %vm731_vm8 = vcmp.eq.s32.totalorder %v1536_v46, 8 }
 0xd6f   :  { %v610_v35 = vsel %vm309_vm4, %v609_v34, 2147483647 }
 0xd70   :  { %v612_v36 = vshra.s32 %v610_v35, 16  ;;  %v611_v38 = vand.u32 65535, %v610_v35 }
 0xd72   :  { %v614_v37 = vcvt.s32.f32 %v612_v36  ;;  %v613_v40 = vcvt.s32.f32 %v611_v38 }
 0xd74   :  { %615 = vmin.xlane.f32.xlu0 %v614_v37 }
 0xde7   :  { %v616_v39 = vpop.xlane.xlu0 %615 }
 0xde8   :  { %vm617_vm9 = vcmp.eq.f32.partialorder %v614_v37, %v616_v39  ;;  %v622_v42 = vcvt.f32.s32 %v616_v39 }
 0xde9   :  { %v618_v41 = vsel %vm617_vm9, %v613_v40, inf }
 0xdea   :  { %619 = vmin.xlane.f32.xlu2 %v618_v41  ;;  %v623_v44 = vshll.u32 %v622_v42, 16 }
 0xe5d   :  { %v620_v43 = vpop.xlane.xlu2 %619 }
 0xe5e   :  { %v621_v45 = vcvt.f32.s32 %v620_v43 }
 0xe60   :  { %v624_v47 = vadd.s32 %v623_v44, %v621_v45 }
 0xe62   :  { %v625_v48 = vrot.slane %v624_v47, 4 }
 0xe64   :  { %vm626_vm10 = vcmp.lt.s32.totalorder %v624_v47, %v625_v48 }
 0xe65   :  { %v627_v49 = vsel %vm626_vm10, %v624_v47, %v625_v48 }
 0xe66   :  { %v628_v50 = vrot.slane %v627_v49, 2 }
 0xe68   :  { %vm629_vm11 = vcmp.lt.s32.totalorder %v627_v49, %v628_v50 }
 0xe69   :  { %v630_v51 = vsel %vm629_vm11, %v627_v49, %v628_v50 }
 0xe6a   :  { %v631_v52 = vrot.slane %v630_v51, 1 }
 0xe6c   :  { %vm632_vm12 = vcmp.lt.s32.totalorder %v630_v51, %v631_v52 }
 0xe6d   :  { %v633_v53 = vsel %vm632_vm12, %v630_v51, %v631_v52 }
 0xe6e   :  { %1144 = vpush %v633_v53 }
 0xe9f   :  { %s1145_s27 = spop %1144 }
 0xea0   :  { %v637_v55 = vstv %s1145_s27  ;;  %s640_s28 = scalar_lea.vmem [#allocation2], %s1145_s27 }
 0xea1   :  { %vm638_vm13 = vcmp.eq.s32.totalorder %v1536_v46, %v637_v55  ;;  %v641_v59 = vld [vmem:[%s640_s28] sm:$0x1] }
 0xea2   :  { %v639_v54 = vsel %vm638_vm13, 1, %v591_v21  ;;  %v642_v63 = vmin.f32 %v594_v22, %v641_v59 }
 0xea3   :  { %vm643_vm14 = vcmp.gt.s32.totalorder %v639_v54, 0 }
 0xea4   :  { %v644_v0 = vsel %vm643_vm14, 1e+30, %v642_v63 }
 0xea5   :  { %v645_v56 = vsel %vm309_vm4, %v644_v0, inf }
 0xea6   :  { %646 = vmin.xlane.f32.xlu0 %v645_v56 }
 0xf19   :  { %v647_v1 = vpop.xlane.xlu0 %646 }
 0xf1a   :  { %v648_v57 = vrot.slane %v647_v1, 4 }
 0xf1c   :  { %v649_v2 = vmin.f32 %v647_v1, %v648_v57 }
 0xf1e   :  { %v650_v4 = vrot.slane %v649_v2, 2 }
 0xf20   :  { %v651_v58 = vmin.f32 %v649_v2, %v650_v4 }
 0xf22   :  { %v652_v60 = vrot.slane %v651_v58, 1 }
 0xf24   :  { %v653_v3 = vmin.f32 %v651_v58, %v652_v60 }
 0xf26   :  { %1146 = vpush %v653_v3 }
 0xf57   :  { %s1147_s29 = spop %1146 }
 0xf58   :  { %v655_v5 = vstv %s1147_s29 }
 0xf59   :  { %vm656_vm0 = vcmp.eq.f32.partialorder %v644_v0, %v655_v5  ;;  %v684_v61 = vsel %vm683_vm15, %v655_v5, %v636_v33 }
 0xf5a   :  { %v657_v6 = vsel %vm656_vm0, %v1536_v46, 128  ;;  %vm779_vm0 = vcmp.eq.s32.totalorder %v1536_v46, 9 }
 0xf5b   :  { %v658_v62 = vsel %vm309_vm4, %v657_v6, 2147483647 }
 0xf5c   :  { %v660_v7 = vshra.s32 %v658_v62, 16  ;;  %v659_v9 = vand.u32 65535, %v658_v62 }
 0xf5e   :  { %v662_v8 = vcvt.s32.f32 %v660_v7  ;;  %v661_v11 = vcvt.s32.f32 %v659_v9 }
 0xf60   :  { %663 = vmin.xlane.f32.xlu2 %v662_v8 }
 0xfd3   :  { %v664_v10 = vpop.xlane.xlu2 %663 }
 0xfd4   :  { %vm665_vm1 = vcmp.eq.f32.partialorder %v662_v8, %v664_v10  ;;  %v670_v13 = vcvt.f32.s32 %v664_v10 }
 0xfd5   :  { %v666_v12 = vsel %vm665_vm1, %v661_v11, inf }
 0xfd6   :  { %667 = vmin.xlane.f32.xlu0 %v666_v12  ;;  %v671_v15 = vshll.u32 %v670_v13, 16 }
0x1049   :  { %v668_v14 = vpop.xlane.xlu0 %667 }
0x104a   :  { %v669_v16 = vcvt.f32.s32 %v668_v14 }
0x104c   :  { %v672_v17 = vadd.s32 %v671_v15, %v669_v16 }
0x104e   :  { %v673_v18 = vrot.slane %v672_v17, 4 }
0x1050   :  { %vm674_vm2 = vcmp.lt.s32.totalorder %v672_v17, %v673_v18 }
0x1051   :  { %v675_v19 = vsel %vm674_vm2, %v672_v17, %v673_v18 }
0x1052   :  { %v676_v20 = vrot.slane %v675_v19, 2 }
0x1054   :  { %vm677_vm3 = vcmp.lt.s32.totalorder %v675_v19, %v676_v20 }
0x1055   :  { %v678_v21 = vsel %vm677_vm3, %v675_v19, %v676_v20 }
0x1056   :  { %v679_v22 = vrot.slane %v678_v21, 1 }
0x1058   :  { %vm680_vm5 = vcmp.lt.s32.totalorder %v678_v21, %v679_v22 }
0x1059   :  { %v681_v23 = vsel %vm680_vm5, %v678_v21, %v679_v22 }
0x105a   :  { %1148 = vpush %v681_v23 }
0x108b   :  { %s1149_s30 = spop %1148 }
0x108c   :  { %v685_v24 = vstv %s1149_s30  ;;  %s688_s2 = scalar_lea.vmem [#allocation2], %s1149_s30 }
0x108d   :  { %vm686_vm6 = vcmp.eq.s32.totalorder %v1536_v46, %v685_v24  ;;  %v689_v25 = vld [vmem:[%s688_s2] sm:$0x1] }
0x108e   :  { %v687_v26 = vsel %vm686_vm6, 1, %v639_v54  ;;  %v690_v27 = vmin.f32 %v642_v63, %v689_v25 }
0x108f   :  { %vm691_vm7 = vcmp.gt.s32.totalorder %v687_v26, 0 }
0x1090   :  { %v692_v28 = vsel %vm691_vm7, 1e+30, %v690_v27 }
0x1091   :  { %v693_v29 = vsel %vm309_vm4, %v692_v28, inf }
0x1092   :  { %694 = vmin.xlane.f32.xlu2 %v693_v29 }
0x1105   :  { %v695_v30 = vpop.xlane.xlu2 %694 }
0x1106   :  { %v696_v31 = vrot.slane %v695_v30, 4 }
0x1108   :  { %v697_v32 = vmin.f32 %v695_v30, %v696_v31 }
0x110a   :  { %v698_v33 = vrot.slane %v697_v32, 2 }
0x110c   :  { %v699_v34 = vmin.f32 %v697_v32, %v698_v33 }
0x110e   :  { %v700_v35 = vrot.slane %v699_v34, 1 }
0x1110   :  { %v701_v36 = vmin.f32 %v699_v34, %v700_v35 }
0x1112   :  { %1150 = vpush %v701_v36 }
0x1143   :  { %s1151_s3 = spop %1150 }
0x1144   :  { %v703_v37 = vstv %s1151_s3 }
0x1145   :  { %vm704_vm9 = vcmp.eq.f32.partialorder %v692_v28, %v703_v37  ;;  %v732_v38 = vsel %vm731_vm8, %v703_v37, %v684_v61 }
0x1146   :  { %v705_v39 = vsel %vm704_vm9, %v1536_v46, 128  ;;  %vm827_vm9 = vcmp.eq.s32.totalorder %v1536_v46, 10 }
0x1147   :  { %v706_v40 = vsel %vm309_vm4, %v705_v39, 2147483647 }
0x1148   :  { %v708_v41 = vshra.s32 %v706_v40, 16  ;;  %v707_v43 = vand.u32 65535, %v706_v40 }
0x114a   :  { %v710_v42 = vcvt.s32.f32 %v708_v41  ;;  %v709_v45 = vcvt.s32.f32 %v707_v43 }
0x114c   :  { %711 = vmin.xlane.f32.xlu0 %v710_v42 }
0x11bf   :  { %v712_v44 = vpop.xlane.xlu0 %711 }
0x11c0   :  { %vm713_vm10 = vcmp.eq.f32.partialorder %v710_v42, %v712_v44  ;;  %v718_v48 = vcvt.f32.s32 %v712_v44 }
0x11c1   :  { %v714_v47 = vsel %vm713_vm10, %v709_v45, inf }
0x11c2   :  { %715 = vmin.xlane.f32.xlu2 %v714_v47  ;;  %v719_v50 = vshll.u32 %v718_v48, 16 }
0x1235   :  { %v716_v49 = vpop.xlane.xlu2 %715 }
0x1236   :  { %v717_v51 = vcvt.f32.s32 %v716_v49 }
0x1238   :  { %v720_v52 = vadd.s32 %v719_v50, %v717_v51 }
0x123a   :  { %v721_v53 = vrot.slane %v720_v52, 4 }
0x123c   :  { %vm722_vm11 = vcmp.lt.s32.totalorder %v720_v52, %v721_v53 }
0x123d   :  { %v723_v55 = vsel %vm722_vm11, %v720_v52, %v721_v53 }
0x123e   :  { %v724_v59 = vrot.slane %v723_v55, 2 }
0x1240   :  { %vm725_vm12 = vcmp.lt.s32.totalorder %v723_v55, %v724_v59 }
0x1241   :  { %v726_v54 = vsel %vm725_vm12, %v723_v55, %v724_v59 }
0x1242   :  { %v727_v63 = vrot.slane %v726_v54, 1 }
0x1244   :  { %vm728_vm13 = vcmp.lt.s32.totalorder %v726_v54, %v727_v63 }
0x1245   :  { %v729_v0 = vsel %vm728_vm13, %v726_v54, %v727_v63 }
0x1246   :  { %1152 = vpush %v729_v0 }
0x1277   :  { %s1153_s4 = spop %1152 }
0x1278   :  { %v733_v56 = vstv %s1153_s4  ;;  %s736_s5 = scalar_lea.vmem [#allocation2], %s1153_s4 }
0x1279   :  { %vm734_vm14 = vcmp.eq.s32.totalorder %v1536_v46, %v733_v56  ;;  %v737_v1 = vld [vmem:[%s736_s5] sm:$0x1] }
0x127a   :  { %v735_v57 = vsel %vm734_vm14, 1, %v687_v26  ;;  %v738_v2 = vmin.f32 %v690_v27, %v737_v1 }
0x127b   :  { %vm739_vm15 = vcmp.gt.s32.totalorder %v735_v57, 0 }
0x127c   :  { %v740_v4 = vsel %vm739_vm15, 1e+30, %v738_v2 }
0x127d   :  { %v741_v58 = vsel %vm309_vm4, %v740_v4, inf }
0x127e   :  { %742 = vmin.xlane.f32.xlu0 %v741_v58 }
0x12f1   :  { %v743_v60 = vpop.xlane.xlu0 %742 }
0x12f2   :  { %v744_v3 = vrot.slane %v743_v60, 4 }
0x12f4   :  { %v745_v5 = vmin.f32 %v743_v60, %v744_v3 }
0x12f6   :  { %v746_v61 = vrot.slane %v745_v5, 2 }
0x12f8   :  { %v747_v6 = vmin.f32 %v745_v5, %v746_v61 }
0x12fa   :  { %v748_v62 = vrot.slane %v747_v6, 1 }
0x12fc   :  { %v749_v7 = vmin.f32 %v747_v6, %v748_v62 }
0x12fe   :  { %1154 = vpush %v749_v7 }
0x132f   :  { %s1155_s6 = spop %1154 }
0x1330   :  { %v751_v8 = vstv %s1155_s6 }
0x1331   :  { %vm752_vm1 = vcmp.eq.f32.partialorder %v740_v4, %v751_v8  ;;  %v780_v9 = vsel %vm779_vm0, %v751_v8, %v732_v38 }
0x1332   :  { %v753_v10 = vsel %vm752_vm1, %v1536_v46, 128  ;;  %vm875_vm1 = vcmp.eq.s32.totalorder %v1536_v46, 11 }
0x1333   :  { %v754_v11 = vsel %vm309_vm4, %v753_v10, 2147483647 }
0x1334   :  { %v756_v12 = vshra.s32 %v754_v11, 16  ;;  %v755_v14 = vand.u32 65535, %v754_v11 }
0x1336   :  { %v758_v13 = vcvt.s32.f32 %v756_v12  ;;  %v757_v16 = vcvt.s32.f32 %v755_v14 }
0x1338   :  { %759 = vmin.xlane.f32.xlu2 %v758_v13 }
0x13ab   :  { %v760_v15 = vpop.xlane.xlu2 %759 }
0x13ac   :  { %vm761_vm2 = vcmp.eq.f32.partialorder %v758_v13, %v760_v15  ;;  %v766_v18 = vcvt.f32.s32 %v760_v15 }
0x13ad   :  { %v762_v17 = vsel %vm761_vm2, %v757_v16, inf }
0x13ae   :  { %763 = vmin.xlane.f32.xlu0 %v762_v17  ;;  %v767_v20 = vshll.u32 %v766_v18, 16 }
0x1421   :  { %v764_v19 = vpop.xlane.xlu0 %763 }
0x1422   :  { %v765_v21 = vcvt.f32.s32 %v764_v19 }
0x1424   :  { %v768_v22 = vadd.s32 %v767_v20, %v765_v21 }
0x1426   :  { %v769_v23 = vrot.slane %v768_v22, 4 }
0x1428   :  { %vm770_vm3 = vcmp.lt.s32.totalorder %v768_v22, %v769_v23 }
0x1429   :  { %v771_v24 = vsel %vm770_vm3, %v768_v22, %v769_v23 }
0x142a   :  { %v772_v25 = vrot.slane %v771_v24, 2 }
0x142c   :  { %vm773_vm5 = vcmp.lt.s32.totalorder %v771_v24, %v772_v25 }
0x142d   :  { %v774_v26 = vsel %vm773_vm5, %v771_v24, %v772_v25 }
0x142e   :  { %v775_v27 = vrot.slane %v774_v26, 1 }
0x1430   :  { %vm776_vm6 = vcmp.lt.s32.totalorder %v774_v26, %v775_v27 }
0x1431   :  { %v777_v28 = vsel %vm776_vm6, %v774_v26, %v775_v27 }
0x1432   :  { %1156 = vpush %v777_v28 }
0x1463   :  { %s1157_s7 = spop %1156 }
0x1464   :  { %v781_v29 = vstv %s1157_s7  ;;  %s784_s8 = scalar_lea.vmem [#allocation2], %s1157_s7 }
0x1465   :  { %vm782_vm7 = vcmp.eq.s32.totalorder %v1536_v46, %v781_v29  ;;  %v785_v30 = vld [vmem:[%s784_s8] sm:$0x1] }
0x1466   :  { %v783_v31 = vsel %vm782_vm7, 1, %v735_v57  ;;  %v786_v32 = vmin.f32 %v738_v2, %v785_v30 }
0x1467   :  { %vm787_vm8 = vcmp.gt.s32.totalorder %v783_v31, 0 }
0x1468   :  { %v788_v33 = vsel %vm787_vm8, 1e+30, %v786_v32 }
0x1469   :  { %v789_v34 = vsel %vm309_vm4, %v788_v33, inf }
0x146a   :  { %790 = vmin.xlane.f32.xlu2 %v789_v34 }
0x14dd   :  { %v791_v35 = vpop.xlane.xlu2 %790 }
0x14de   :  { %v792_v36 = vrot.slane %v791_v35, 4 }
0x14e0   :  { %v793_v37 = vmin.f32 %v791_v35, %v792_v36 }
0x14e2   :  { %v794_v38 = vrot.slane %v793_v37, 2 }
0x14e4   :  { %v795_v39 = vmin.f32 %v793_v37, %v794_v38 }
0x14e6   :  { %v796_v40 = vrot.slane %v795_v39, 1 }
0x14e8   :  { %v797_v41 = vmin.f32 %v795_v39, %v796_v40 }
0x14ea   :  { %1158 = vpush %v797_v41 }
0x151b   :  { %s1159_s0 = spop %1158 }
0x151c   :  { %v799_v42 = vstv %s1159_s0 }
0x151d   :  { %vm800_vm10 = vcmp.eq.f32.partialorder %v788_v33, %v799_v42  ;;  %v828_v43 = vsel %vm827_vm9, %v799_v42, %v780_v9 }
0x151e   :  { %v801_v44 = vsel %vm800_vm10, %v1536_v46, 128  ;;  %vm923_vm10 = vcmp.eq.s32.totalorder %v1536_v46, 12 }
0x151f   :  { %v802_v45 = vsel %vm309_vm4, %v801_v44, 2147483647 }
0x1520   :  { %v804_v47 = vshra.s32 %v802_v45, 16  ;;  %v803_v49 = vand.u32 65535, %v802_v45 }
0x1522   :  { %v806_v48 = vcvt.s32.f32 %v804_v47  ;;  %v805_v51 = vcvt.s32.f32 %v803_v49 }
0x1524   :  { %807 = vmin.xlane.f32.xlu0 %v806_v48 }
0x1597   :  { %v808_v50 = vpop.xlane.xlu0 %807 }
0x1598   :  { %vm809_vm11 = vcmp.eq.f32.partialorder %v806_v48, %v808_v50  ;;  %v814_v53 = vcvt.f32.s32 %v808_v50 }
0x1599   :  { %v810_v52 = vsel %vm809_vm11, %v805_v51, inf }
0x159a   :  { %811 = vmin.xlane.f32.xlu2 %v810_v52  ;;  %v815_v59 = vshll.u32 %v814_v53, 16 }
0x160d   :  { %v812_v55 = vpop.xlane.xlu2 %811 }
0x160e   :  { %v813_v54 = vcvt.f32.s32 %v812_v55 }
0x1610   :  { %v816_v63 = vadd.s32 %v815_v59, %v813_v54 }
0x1612   :  { %v817_v0 = vrot.slane %v816_v63, 4 }
0x1614   :  { %vm818_vm12 = vcmp.lt.s32.totalorder %v816_v63, %v817_v0 }
0x1615   :  { %v819_v56 = vsel %vm818_vm12, %v816_v63, %v817_v0 }
0x1616   :  { %v820_v1 = vrot.slane %v819_v56, 2 }
0x1618   :  { %vm821_vm13 = vcmp.lt.s32.totalorder %v819_v56, %v820_v1 }
0x1619   :  { %v822_v57 = vsel %vm821_vm13, %v819_v56, %v820_v1 }
0x161a   :  { %v823_v2 = vrot.slane %v822_v57, 1 }
0x161c   :  { %vm824_vm14 = vcmp.lt.s32.totalorder %v822_v57, %v823_v2 }
0x161d   :  { %v825_v4 = vsel %vm824_vm14, %v822_v57, %v823_v2 }
0x161e   :  { %1160 = vpush %v825_v4 }
0x164f   :  { %s1161_s9 = spop %1160 }
0x1650   :  { %v829_v58 = vstv %s1161_s9  ;;  %s832_s10 = scalar_lea.vmem [#allocation2], %s1161_s9 }
0x1651   :  { %vm830_vm15 = vcmp.eq.s32.totalorder %v1536_v46, %v829_v58  ;;  %v833_v60 = vld [vmem:[%s832_s10] sm:$0x1] }
0x1652   :  { %v831_v3 = vsel %vm830_vm15, 1, %v783_v31  ;;  %v834_v5 = vmin.f32 %v786_v32, %v833_v60 }
0x1653   :  { %vm835_vm0 = vcmp.gt.s32.totalorder %v831_v3, 0 }
0x1654   :  { %v836_v61 = vsel %vm835_vm0, 1e+30, %v834_v5 }
0x1655   :  { %v837_v6 = vsel %vm309_vm4, %v836_v61, inf }
0x1656   :  { %838 = vmin.xlane.f32.xlu0 %v837_v6 }
0x16c9   :  { %v839_v62 = vpop.xlane.xlu0 %838 }
0x16ca   :  { %v840_v7 = vrot.slane %v839_v62, 4 }
0x16cc   :  { %v841_v8 = vmin.f32 %v839_v62, %v840_v7 }
0x16ce   :  { %v842_v9 = vrot.slane %v841_v8, 2 }
0x16d0   :  { %v843_v10 = vmin.f32 %v841_v8, %v842_v9 }
0x16d2   :  { %v844_v11 = vrot.slane %v843_v10, 1 }
0x16d4   :  { %v845_v12 = vmin.f32 %v843_v10, %v844_v11 }
0x16d6   :  { %1162 = vpush %v845_v12 }
0x1707   :  { %s1163_s11 = spop %1162 }
0x1708   :  { %v847_v13 = vstv %s1163_s11 }
0x1709   :  { %vm848_vm2 = vcmp.eq.f32.partialorder %v836_v61, %v847_v13  ;;  %v876_v14 = vsel %vm875_vm1, %v847_v13, %v828_v43 }
0x170a   :  { %v849_v15 = vsel %vm848_vm2, %v1536_v46, 128  ;;  %vm971_vm2 = vcmp.eq.s32.totalorder %v1536_v46, 13 }
0x170b   :  { %v850_v16 = vsel %vm309_vm4, %v849_v15, 2147483647 }
0x170c   :  { %v852_v17 = vshra.s32 %v850_v16, 16  ;;  %v851_v19 = vand.u32 65535, %v850_v16 }
0x170e   :  { %v854_v18 = vcvt.s32.f32 %v852_v17  ;;  %v853_v21 = vcvt.s32.f32 %v851_v19 }
0x1710   :  { %855 = vmin.xlane.f32.xlu2 %v854_v18 }
0x1783   :  { %v856_v20 = vpop.xlane.xlu2 %855 }
0x1784   :  { %vm857_vm3 = vcmp.eq.f32.partialorder %v854_v18, %v856_v20  ;;  %v862_v23 = vcvt.f32.s32 %v856_v20 }
0x1785   :  { %v858_v22 = vsel %vm857_vm3, %v853_v21, inf }
0x1786   :  { %859 = vmin.xlane.f32.xlu0 %v858_v22  ;;  %v863_v25 = vshll.u32 %v862_v23, 16 }
0x17f9   :  { %v860_v24 = vpop.xlane.xlu0 %859 }
0x17fa   :  { %v861_v26 = vcvt.f32.s32 %v860_v24 }
0x17fc   :  { %v864_v27 = vadd.s32 %v863_v25, %v861_v26 }
0x17fe   :  { %v865_v28 = vrot.slane %v864_v27, 4 }
0x1800   :  { %vm866_vm5 = vcmp.lt.s32.totalorder %v864_v27, %v865_v28 }
0x1801   :  { %v867_v29 = vsel %vm866_vm5, %v864_v27, %v865_v28 }
0x1802   :  { %v868_v30 = vrot.slane %v867_v29, 2 }
0x1804   :  { %vm869_vm6 = vcmp.lt.s32.totalorder %v867_v29, %v868_v30 }
0x1805   :  { %v870_v31 = vsel %vm869_vm6, %v867_v29, %v868_v30 }
0x1806   :  { %v871_v32 = vrot.slane %v870_v31, 1 }
0x1808   :  { %vm872_vm7 = vcmp.lt.s32.totalorder %v870_v31, %v871_v32 }
0x1809   :  { %v873_v33 = vsel %vm872_vm7, %v870_v31, %v871_v32 }
0x180a   :  { %1164 = vpush %v873_v33 }
0x183b   :  { %s1165_s12 = spop %1164 }
0x183c   :  { %v877_v34 = vstv %s1165_s12  ;;  %s880_s13 = scalar_lea.vmem [#allocation2], %s1165_s12 }
0x183d   :  { %vm878_vm8 = vcmp.eq.s32.totalorder %v1536_v46, %v877_v34  ;;  %v881_v35 = vld [vmem:[%s880_s13] sm:$0x1] }
0x183e   :  { %v879_v36 = vsel %vm878_vm8, 1, %v831_v3  ;;  %v882_v37 = vmin.f32 %v834_v5, %v881_v35 }
0x183f   :  { %vm883_vm9 = vcmp.gt.s32.totalorder %v879_v36, 0 }
0x1840   :  { %v884_v38 = vsel %vm883_vm9, 1e+30, %v882_v37 }
0x1841   :  { %v885_v39 = vsel %vm309_vm4, %v884_v38, inf }
0x1842   :  { %886 = vmin.xlane.f32.xlu2 %v885_v39 }
0x18b5   :  { %v887_v40 = vpop.xlane.xlu2 %886 }
0x18b6   :  { %v888_v41 = vrot.slane %v887_v40, 4 }
0x18b8   :  { %v889_v42 = vmin.f32 %v887_v40, %v888_v41 }
0x18ba   :  { %v890_v43 = vrot.slane %v889_v42, 2 }
0x18bc   :  { %v891_v44 = vmin.f32 %v889_v42, %v890_v43 }
0x18be   :  { %v892_v45 = vrot.slane %v891_v44, 1 }
0x18c0   :  { %v893_v47 = vmin.f32 %v891_v44, %v892_v45 }
0x18c2   :  { %1166 = vpush %v893_v47 }
0x18f3   :  { %s1167_s14 = spop %1166 }
0x18f4   :  { %v895_v48 = vstv %s1167_s14 }
0x18f5   :  { %vm896_vm11 = vcmp.eq.f32.partialorder %v884_v38, %v895_v48  ;;  %v924_v49 = vsel %vm923_vm10, %v895_v48, %v876_v14 }
0x18f6   :  { %v897_v50 = vsel %vm896_vm11, %v1536_v46, 128  ;;  %vm991_vm11 = vcmp.eq.s32.totalorder %v1536_v46, 14 }
0x18f7   :  { %v898_v51 = vsel %vm309_vm4, %v897_v50, 2147483647 }
0x18f8   :  { %v900_v52 = vshra.s32 %v898_v51, 16  ;;  %v899_v55 = vand.u32 65535, %v898_v51 }
0x18fa   :  { %v902_v53 = vcvt.s32.f32 %v900_v52  ;;  %v901_v54 = vcvt.s32.f32 %v899_v55 }
0x18fc   :  { %903 = vmin.xlane.f32.xlu0 %v902_v53 }
0x196f   :  { %v904_v59 = vpop.xlane.xlu0 %903 }
0x1970   :  { %vm905_vm12 = vcmp.eq.f32.partialorder %v902_v53, %v904_v59  ;;  %v910_v0 = vcvt.f32.s32 %v904_v59 }
0x1971   :  { %v906_v63 = vsel %vm905_vm12, %v901_v54, inf }
0x1972   :  { %907 = vmin.xlane.f32.xlu2 %v906_v63  ;;  %v911_v1 = vshll.u32 %v910_v0, 16 }
0x19e5   :  { %v908_v56 = vpop.xlane.xlu2 %907 }
0x19e6   :  { %v909_v57 = vcvt.f32.s32 %v908_v56 }
0x19e8   :  { %v912_v2 = vadd.s32 %v911_v1, %v909_v57 }
0x19ea   :  { %v913_v4 = vrot.slane %v912_v2, 4 }
0x19ec   :  { %vm914_vm13 = vcmp.lt.s32.totalorder %v912_v2, %v913_v4 }
0x19ed   :  { %v915_v58 = vsel %vm914_vm13, %v912_v2, %v913_v4 }
0x19ee   :  { %v916_v60 = vrot.slane %v915_v58, 2 }
0x19f0   :  { %vm917_vm14 = vcmp.lt.s32.totalorder %v915_v58, %v916_v60 }
0x19f1   :  { %v918_v3 = vsel %vm917_vm14, %v915_v58, %v916_v60 }
0x19f2   :  { %v919_v5 = vrot.slane %v918_v3, 1 }
0x19f4   :  { %vm920_vm15 = vcmp.lt.s32.totalorder %v918_v3, %v919_v5 }
0x19f5   :  { %v921_v61 = vsel %vm920_vm15, %v918_v3, %v919_v5 }
0x19f6   :  { %1168 = vpush %v921_v61 }
0x1a27   :  { %s1169_s15 = spop %1168 }
0x1a28   :  { %v925_v6 = vstv %s1169_s15  ;;  %s928_s16 = scalar_lea.vmem [#allocation2], %s1169_s15 }
0x1a29   :  { %vm926_vm0 = vcmp.eq.s32.totalorder %v1536_v46, %v925_v6  ;;  %v929_v62 = vld [vmem:[%s928_s16] sm:$0x1] }
0x1a2a   :  { %v927_v7 = vsel %vm926_vm0, 1, %v879_v36  ;;  %v930_v8 = vmin.f32 %v882_v37, %v929_v62 }
0x1a2b   :  { %vm931_vm1 = vcmp.gt.s32.totalorder %v927_v7, 0 }
0x1a2c   :  { %v932_v9 = vsel %vm931_vm1, 1e+30, %v930_v8 }
0x1a2d   :  { %v933_v10 = vsel %vm309_vm4, %v932_v9, inf }
0x1a2e   :  { %934 = vmin.xlane.f32.xlu0 %v933_v10 }
0x1aa1   :  { %v935_v11 = vpop.xlane.xlu0 %934 }
0x1aa2   :  { %v936_v12 = vrot.slane %v935_v11, 4 }
0x1aa4   :  { %v937_v13 = vmin.f32 %v935_v11, %v936_v12 }
0x1aa6   :  { %v938_v14 = vrot.slane %v937_v13, 2 }
0x1aa8   :  { %v939_v15 = vmin.f32 %v937_v13, %v938_v14 }
0x1aaa   :  { %v940_v16 = vrot.slane %v939_v15, 1 }
0x1aac   :  { %v941_v17 = vmin.f32 %v939_v15, %v940_v16 }
0x1aae   :  { %1170 = vpush %v941_v17 }
0x1adf   :  { %s1171_s17 = spop %1170 }
0x1ae0   :  { %v943_v18 = vstv %s1171_s17 }
0x1ae1   :  { %vm944_vm3 = vcmp.eq.f32.partialorder %v932_v9, %v943_v18  ;;  %v972_v19 = vsel %vm971_vm2, %v943_v18, %v924_v49 }
0x1ae2   :  { %v945_v20 = vsel %vm944_vm3, %v1536_v46, 128 }
0x1ae3   :  { %v946_v21 = vsel %vm309_vm4, %v945_v20, 2147483647 }
0x1ae4   :  { %v948_v22 = vshra.s32 %v946_v21, 16  ;;  %v947_v24 = vand.u32 65535, %v946_v21 }
0x1ae6   :  { %v950_v23 = vcvt.s32.f32 %v948_v22  ;;  %v949_v26 = vcvt.s32.f32 %v947_v24 }
0x1ae8   :  { %951 = vmin.xlane.f32.xlu2 %v950_v23 }
0x1b5b   :  { %v952_v25 = vpop.xlane.xlu2 %951 }
0x1b5c   :  { %vm953_vm5 = vcmp.eq.f32.partialorder %v950_v23, %v952_v25  ;;  %v958_v28 = vcvt.f32.s32 %v952_v25 }
0x1b5d   :  { %v954_v27 = vsel %vm953_vm5, %v949_v26, inf }
0x1b5e   :  { %955 = vmin.xlane.f32.xlu0 %v954_v27  ;;  %v959_v30 = vshll.u32 %v958_v28, 16 }
0x1bd1   :  { %v956_v29 = vpop.xlane.xlu0 %955 }
0x1bd2   :  { %v957_v31 = vcvt.f32.s32 %v956_v29 }
0x1bd4   :  { %v960_v32 = vadd.s32 %v959_v30, %v957_v31 }
0x1bd6   :  { %v961_v33 = vrot.slane %v960_v32, 4 }
0x1bd8   :  { %vm962_vm6 = vcmp.lt.s32.totalorder %v960_v32, %v961_v33 }
0x1bd9   :  { %v963_v34 = vsel %vm962_vm6, %v960_v32, %v961_v33 }
0x1bda   :  { %v964_v35 = vrot.slane %v963_v34, 2 }
0x1bdc   :  { %vm965_vm7 = vcmp.lt.s32.totalorder %v963_v34, %v964_v35 }
0x1bdd   :  { %v966_v36 = vsel %vm965_vm7, %v963_v34, %v964_v35 }
0x1bde   :  { %v967_v37 = vrot.slane %v966_v36, 1 }
0x1be0   :  { %vm968_vm8 = vcmp.lt.s32.totalorder %v966_v36, %v967_v37 }
0x1be1   :  { %v969_v38 = vsel %vm968_vm8, %v966_v36, %v967_v37 }
0x1be2   :  { %1172 = vpush %v969_v38 }
0x1c13   :  { %s1173_s18 = spop %1172 }
0x1c14   :  { %v973_v39 = vstv %s1173_s18  ;;  %s976_s19 = scalar_lea.vmem [#allocation2], %s1173_s18 }
0x1c15   :  { %vm974_vm9 = vcmp.eq.s32.totalorder %v1536_v46, %v973_v39  ;;  %v977_v40 = vld [vmem:[%s976_s19] sm:$0x1] }
0x1c16   :  { %v975_v41 = vsel %vm974_vm9, 1, %v927_v7  ;;  %v978_v42 = vmin.f32 %v930_v8, %v977_v40 }
0x1c17   :  { %vm979_vm10 = vcmp.gt.s32.totalorder %v975_v41, 0 }
0x1c18   :  { %v980_v43 = vsel %vm979_vm10, 1e+30, %v978_v42 }
0x1c19   :  { %v981_v44 = vsel %vm309_vm4, %v980_v43, inf }
0x1c1a   :  { %982 = vmin.xlane.f32.xlu2 %v981_v44 }
0x1c8d   :  { %v983_v45 = vpop.xlane.xlu2 %982 }
0x1c8e   :  { %v984_v47 = vrot.slane %v983_v45, 4 }
0x1c90   :  { %v985_v48 = vmin.f32 %v983_v45, %v984_v47 }
0x1c92   :  { %v986_v49 = vrot.slane %v985_v48, 2 }
0x1c94   :  { %v987_v50 = vmin.f32 %v985_v48, %v986_v49 }
0x1c96   :  { %v988_v51 = vrot.slane %v987_v50, 1 }
0x1c98   :  { %v989_v52 = vmin.f32 %v987_v50, %v988_v51 }
0x1c9a   :  { %1174 = vpush %v989_v52 }
0x1ccb   :  { %s1175_s20 = spop %1174 }
0x1ccc   :  { %v992_v53 = vstv %s1175_s20 }
0x1ccd   :  { %v993_v55 = vsel %vm991_vm11, %v992_v53, %v972_v19 }
0x1cce   :  { %v994_v59 = vmax.f32 %v993_v55, 0.0 }
0x1cd0   :  { %1178 = vrsqrt.f32 %v994_v59  ;;  %vm1002_vm4 = vcmp.eq.f32.partialorder %v994_v59, inf  ;;  %v1005_v46 = vand.u32 2147483648, %v994_v59  ;;  %vm1004_vm12 = vcmp.eq.f32.partialorder %v994_v59, 0.0 }
0x1cd6   :  { %v1179_v54 = vpop.eup %1178 }
0x1cd7   :  { %v996_v63 = vmul.f32 %v1179_v54, %v994_v59 }
0x1cd9   :  { %v997_v0 = vmul.f32 %v1179_v54, %v996_v63 }
0x1cdb   :  { %v998_v56 = vmul.f32 0.5, %v997_v0 }
0x1cdd   :  { %v999_v1 = vsub.f32 1.5, %v998_v56 }
0x1cdf   :  { %v1000_v57 = vmul.f32 %v1179_v54, %v999_v1 }
0x1ce1   :  { %v1001_v2 = vmul.f32 %v1000_v57, %v994_v59 }
0x1ce3   :  { %v1003_v4 = vsel %vm1002_vm4, %v994_v59, %v1001_v2 }
0x1ce4   :  { %v1006_v58 = vsel %vm1004_vm12, %v1005_v46, %v1003_v4 }
0x1ce5   :  { %1007 = vst [vmem:[#allocation3] sm:$0x1] %v1006_v58 }
0x1ce6   :  { %1018 = dma.vmem_to_hbm [thread:$0]  %s1014_s22, 16, %s1016_s25, [#allocation4]  }
0x1ce7   :  { %1204 = dma.done.wait [#allocation4], 16  }
0x1ce8   :  { %1205 = vsyncadd [#allocation4], 4294967280 }
0x1ce9   :  { %1023 = vsyncpa [#allocation4], 1 }

</bundles_post_ra>
